<compile_context>
chip_gen: v7x
topology: tpu7x:2x2x1
jax: 0.10.0
libtpu: 0.0.40
codegen_flags: <defaults>
</compile_context>

<pallas_src>
import jax
import jax.numpy as jnp
from jax import lax
from jax.experimental import pallas as pl
from jax.experimental.pallas import tpu as pltpu

H = 32          # hidden size
T = 8           # token length (sequence length)
I = 64          # FFN intermediate size
VOCAB = 50
NUM_LAYERS = 2  # ALBERT-style: the SAME layer params are applied repeatedly
EPS = 1e-12


def _layernorm(x, g, b):
    mu = jnp.mean(x, axis=-1, keepdims=True)
    var = jnp.mean((x - mu) ** 2, axis=-1, keepdims=True)
    return (x - mu) * lax.rsqrt(var + EPS) * g + b


def _bcast_spec(arr):
    """Full-array block, same block for every grid step (broadcast weights)."""
    nd = arr.ndim
    return pl.BlockSpec(arr.shape, lambda i, _nd=nd: (0,) * _nd)


# ----------------------------------------------------------------------------
# Single fused kernel: embeddings + NUM_LAYERS shared encoder layers + head.
# One grid step handles a chunk of `nc` sequences (nt = nc*T token rows).
# ----------------------------------------------------------------------------
def fused_albert_kernel(ids_ref, wemb_ref, pemb_ref,
                        wqkv_ref, bqkv_ref, wo_ref, bo_ref,
                        w1_ref, b1_ref, w2_ref, b2_ref, ln_ref,
                        wp_ref, bp_ref, wf1_ref, bf1_ref, wf2t_ref, bf2_ref,
                        o_ref):
    nt = ids_ref.shape[1]            # rows in this chunk = nc * T
    nc = nt // T

    # --- embedding lookup as a one-hot matmul (gather stays on the MXU) ---
    ids = ids_ref[0]                                                  # (nt, 1) i32
    onehot = (ids == lax.broadcasted_iota(jnp.int32, (nt, VOCAB), 1)
              ).astype(jnp.float32)                                   # (nt, VOCAB)
    x = jnp.dot(onehot, wemb_ref[...], preferred_element_type=jnp.float32)
    x = x + pemb_ref[...]                      # position emb, pre-tiled to (nt, H)

    # --- hoist bias / layernorm broadcasts out of the shared-layer loop ---
    bqkv = jnp.broadcast_to(bqkv_ref[...], (nt, 3 * H))
    bo = jnp.broadcast_to(bo_ref[...], (nt, H))
    b1 = jnp.broadcast_to(b1_ref[...], (nt, I))
    b2 = jnp.broadcast_to(b2_ref[...], (nt, H))
    ln = ln_ref[...]                                                  # (4, H)
    g1 = jnp.broadcast_to(ln[0:1], (nt, H))
    be1 = jnp.broadcast_to(ln[1:2], (nt, H))
    g2 = jnp.broadcast_to(ln[2:3], (nt, H))
    be2 = jnp.broadcast_to(ln[3:4], (nt, H))

    scale = jnp.float32(1.0 / (H ** 0.5))

    # NOTE: at a scaled-up H the matmul operands should be cast to bf16 on
    # v6e/v7x (keep preferred_element_type=f32); kept f32 at this toy size.
    for _ in range(NUM_LAYERS):                    # ALBERT shared layer, unrolled
        qkv = jnp.dot(x, wqkv_ref[...], preferred_element_type=jnp.float32) + bqkv
        q = qkv[:, :H].reshape(nc, T, H)
        k = qkv[:, H:2 * H].reshape(nc, T, H)
        v = qkv[:, 2 * H:].reshape(nc, T, H)

        s = jnp.einsum("ntd,nsd->nts", q, k,
                       preferred_element_type=jnp.float32) * scale    # (nc, T, T)
        s = s - jnp.max(s, axis=-1, keepdims=True)
        p = jnp.exp(s)
        p = p * pl.reciprocal(jnp.sum(p, axis=-1, keepdims=True), approx=True)

        ctx = jnp.einsum("nts,nsd->ntd", p, v,
                         preferred_element_type=jnp.float32).reshape(nt, H)
        attn = jnp.dot(ctx, wo_ref[...], preferred_element_type=jnp.float32) + bo
        h = _layernorm(x + attn, g1, be1)

        f = jnp.dot(h, w1_ref[...], preferred_element_type=jnp.float32) + b1
        f = jax.nn.gelu(f, approximate=True)
        f = jnp.dot(f, w2_ref[...], preferred_element_type=jnp.float32) + b2
        x = _layernorm(h + f, g2, be2)

    # --- pooler ([CLS] tanh) + fc1 + fc2 head, lane-major (1, nc) output ---
    cls = x.reshape(nc, T, H)[:, 0, :]                                # (nc, H)
    pooled = jnp.tanh(jnp.dot(cls, wp_ref[...],
                              preferred_element_type=jnp.float32) + bp_ref[...])
    f1 = jnp.dot(pooled, wf1_ref[...],
                 preferred_element_type=jnp.float32) + bf1_ref[...]
    # (1, H) x (nc, H)^T contraction -> logits already lane-major (1, nc)
    out = lax.dot_general(wf2t_ref[...], f1, (((1,), (1,)), ((), ())),
                          preferred_element_type=jnp.float32)
    o_ref[0] = (out + bf2_ref[0, 0]).astype(o_ref.dtype)
    # note: self.sigmoid is defined in the torch module but never used in forward


# ----------------------------------------------------------------------------
# Wrapper: one pallas_call, grid = chunks of sequences (2 -> both v7x cores).
# ----------------------------------------------------------------------------
def albert_for_race(token_ids, params):
    b, o, t = token_ids.shape
    assert t == T
    n = b * o
    num_chunks = 2 if n % 2 == 0 else 1        # size-2 "parallel" axis for v7x TCs
    nc = n // num_chunks

    ids_col = token_ids.reshape(num_chunks, nc * t, 1).astype(jnp.int32)
    pos_tiled = jnp.tile(params["pos_emb"], (nc, 1))                  # (nc*T, H)

    layer = params["layer"]
    head = params["head"]
    args = (ids_col, params["word_emb"], pos_tiled) + tuple(layer) + tuple(head)

    in_specs = [pl.BlockSpec((1, nc * t, 1), lambda i: (i, 0, 0)),
                _bcast_spec(params["word_emb"]),
                _bcast_spec(pos_tiled)]
    in_specs += [_bcast_spec(p) for p in layer]
    in_specs += [_bcast_spec(p) for p in head[:-1]]
    in_specs += [pl.BlockSpec(memory_space=pltpu.MemorySpace.SMEM)]   # fc2 bias scalar

    out = pl.pallas_call(
        fused_albert_kernel,
        out_shape=jax.ShapeDtypeStruct((num_chunks, 1, nc), jnp.float32),
        grid=(num_chunks,),
        in_specs=in_specs,
        out_specs=pl.BlockSpec((1, 1, nc), lambda i: (i, 0, 0)),
        compiler_params=pltpu.CompilerParams(dimension_semantics=("parallel",)),
    )(*args)
    return out.reshape(b, o)                   # (-1, options_num)


# ----------------------------------------------------------------------------
# Parameters (deterministic synthetic init).
# ----------------------------------------------------------------------------
def init_params(key):
    keys = jax.random.split(key, 20)
    s = 0.02

    def w(k, shape):
        return jax.random.normal(k, shape, jnp.float32) * s

    ln = jnp.concatenate([1.0 + w(keys[10], (1, H)), w(keys[11], (1, H)),
                          1.0 + w(keys[12], (1, H)), w(keys[13], (1, H))], axis=0)
    return {
        "word_emb": w(keys[0], (VOCAB, H)),
        "pos_emb": w(keys[1], (T, H)),
        "layer": (
            w(keys[2], (H, 3 * H)), w(keys[3], (1, 3 * H)),   # fused QKV
            w(keys[4], (H, H)), w(keys[5], (1, H)),           # attn output proj
            w(keys[6], (H, I)), w(keys[7], (1, I)),           # FFN in
            w(keys[8], (I, H)), w(keys[9], (1, H)),           # FFN out
            ln,                                               # [g1, be1, g2, be2]
        ),
        "head": (
            w(keys[14], (H, H)), w(keys[15], (1, H)),         # pooler
            w(keys[16], (H, H)), w(keys[17], (1, H)),         # fc1
            w(keys[18], (1, H)), w(keys[19], (1, 1)),         # fc2 (stored transposed)
        ),
    }


# Pure-JAX reference (same math) for a sanity check.
def _reference(token_ids, params):
    b, o, t = token_ids.shape
    flat = token_ids.reshape(b * o, t)
    x = params["word_emb"][flat] + params["pos_emb"][None]
    wqkv, bqkv, wo, bo, w1, b1, w2, b2, ln = params["layer"]
    g1, be1, g2, be2 = ln[0], ln[1], ln[2], ln[3]
    for _ in range(NUM_LAYERS):
        qkv = x @ wqkv + bqkv
        q, k, v = qkv[..., :H], qkv[..., H:2 * H], qkv[..., 2 * H:]
        s = jnp.einsum("ntd,nsd->nts", q, k) / jnp.sqrt(jnp.float32(H))
        p = jax.nn.softmax(s, axis=-1)
        attn = jnp.einsum("nts,nsd->ntd", p, v) @ wo + bo
        h = _layernorm(x + attn, g1, be1)
        f = jax.nn.gelu(h @ w1 + b1, approximate=True) @ w2 + b2
        x = _layernorm(h + f, g2, be2)
    wp, bp, wf1, bf1, wf2t, bf2 = params["head"]
    pooled = jnp.tanh(x[:, 0, :] @ wp + bp)
    f1 = pooled @ wf1 + bf1
    out = f1 @ wf2t.T + bf2
    return out.reshape(b, o)


if __name__ == "__main__":
    key = jax.random.PRNGKey(0)
    pkey, dkey = jax.random.split(key)
    params = init_params(pkey)

    B, O = 2, 4
    token_ids = jax.random.randint(dkey, (B, O, T), 0, VOCAB, dtype=jnp.int32)

    out = albert_for_race(token_ids, params)
    out = jax.block_until_ready(out)
    assert out.shape == (B, O), out.shape

    ref = _reference(token_ids, params)
    assert jnp.allclose(out, ref, rtol=2e-2, atol=2e-3), (out, ref)

    print("KERNEL_OK")
</pallas_src>

<mosaic_0001>
module attributes {stable_mosaic.version = 11 : i64} {
  func.func @fused_albert_kernel(%arg0: i32, %arg1: memref<1x32x1xi32, #tpu.memory_space<vmem>>, %arg2: memref<50x32xf32, #tpu.memory_space<vmem>>, %arg3: memref<32x32xf32, #tpu.memory_space<vmem>>, %arg4: memref<32x96xf32, #tpu.memory_space<vmem>>, %arg5: memref<1x96xf32, #tpu.memory_space<vmem>>, %arg6: memref<32x32xf32, #tpu.memory_space<vmem>>, %arg7: memref<1x32xf32, #tpu.memory_space<vmem>>, %arg8: memref<32x64xf32, #tpu.memory_space<vmem>>, %arg9: memref<1x64xf32, #tpu.memory_space<vmem>>, %arg10: memref<64x32xf32, #tpu.memory_space<vmem>>, %arg11: memref<1x32xf32, #tpu.memory_space<vmem>>, %arg12: memref<4x32xf32, #tpu.memory_space<vmem>>, %arg13: memref<32x32xf32, #tpu.memory_space<vmem>>, %arg14: memref<1x32xf32, #tpu.memory_space<vmem>>, %arg15: memref<32x32xf32, #tpu.memory_space<vmem>>, %arg16: memref<1x32xf32, #tpu.memory_space<vmem>>, %arg17: memref<1x32xf32, #tpu.memory_space<vmem>>, %arg18: memref<1x1xf32, #tpu.memory_space<smem>>, %arg19: memref<1x1x4xf32, #tpu.memory_space<vmem>>) attributes {dimension_semantics = [#tpu.dimension_semantics<parallel>], iteration_bounds = array<i64: 2>, scalar_prefetch = 0 : i64, scratch_operands = 0 : i64, tpu.core_type = #tpu.core_type<tc>, window_params = [{transform_indices = @transform_0, window_bounds = array<i64: 1, 32, 1>}, {pipeline_mode = #tpu.pipeline_mode<synchronous>, transform_indices = @transform_1, window_bounds = array<i64: 50, 32>}, {pipeline_mode = #tpu.pipeline_mode<synchronous>, transform_indices = @transform_2, window_bounds = array<i64: 32, 32>}, {pipeline_mode = #tpu.pipeline_mode<synchronous>, transform_indices = @transform_3, window_bounds = array<i64: 32, 96>}, {pipeline_mode = #tpu.pipeline_mode<synchronous>, transform_indices = @transform_4, window_bounds = array<i64: 1, 96>}, {pipeline_mode = #tpu.pipeline_mode<synchronous>, transform_indices = @transform_5, window_bounds = array<i64: 32, 32>}, {pipeline_mode = #tpu.pipeline_mode<synchronous>, transform_indices = @transform_6, window_bounds = array<i64: 1, 32>}, {pipeline_mode = #tpu.pipeline_mode<synchronous>, transform_indices = @transform_7, window_bounds = array<i64: 32, 64>}, {pipeline_mode = #tpu.pipeline_mode<synchronous>, transform_indices = @transform_8, window_bounds = array<i64: 1, 64>}, {pipeline_mode = #tpu.pipeline_mode<synchronous>, transform_indices = @transform_9, window_bounds = array<i64: 64, 32>}, {pipeline_mode = #tpu.pipeline_mode<synchronous>, transform_indices = @transform_10, window_bounds = array<i64: 1, 32>}, {pipeline_mode = #tpu.pipeline_mode<synchronous>, transform_indices = @transform_11, window_bounds = array<i64: 4, 32>}, {pipeline_mode = #tpu.pipeline_mode<synchronous>, transform_indices = @transform_12, window_bounds = array<i64: 32, 32>}, {pipeline_mode = #tpu.pipeline_mode<synchronous>, transform_indices = @transform_13, window_bounds = array<i64: 1, 32>}, {pipeline_mode = #tpu.pipeline_mode<synchronous>, transform_indices = @transform_14, window_bounds = array<i64: 32, 32>}, {pipeline_mode = #tpu.pipeline_mode<synchronous>, transform_indices = @transform_15, window_bounds = array<i64: 1, 32>}, {pipeline_mode = #tpu.pipeline_mode<synchronous>, transform_indices = @transform_16, window_bounds = array<i64: 1, 32>}, {transform_indices = @transform_17, window_bounds = array<i64: 1, 1>}, {transform_indices = @transform_18, window_bounds = array<i64: 1, 1, 4>}]} {
    %c0 = arith.constant 0 : index
    %c0_0 = arith.constant 0 : index
    %c0_1 = arith.constant 0 : index
    %0 = vector.load %arg1[%c0, %c0_0, %c0_1] : memref<1x32x1xi32, #tpu.memory_space<vmem>>, vector<1x32x1xi32>
    %1 = vector.shape_cast %0 : vector<1x32x1xi32> to vector<32x1xi32>
    %2 = tpu.iota {dimensions = array<i32: 1>} : vector<32x50xi32>
    %3 = vector.broadcast %1 : vector<32x1xi32> to vector<32x50xi32>
    %4 = arith.cmpi eq, %3, %2 : vector<32x50xi32>
    %5 = arith.extui %4 : vector<32x50xi1> to vector<32x50xi32>
    %6 = arith.sitofp %5 : vector<32x50xi32> to vector<32x50xf32>
    %c0_2 = arith.constant 0 : index
    %c0_3 = arith.constant 0 : index
    %7 = vector.load %arg2[%c0_2, %c0_3] : memref<50x32xf32, #tpu.memory_space<vmem>>, vector<50x32xf32>
    %cst = arith.constant dense<0.000000e+00> : vector<32x32xf32>
    %8 = tpu.matmul %6, %7, %cst {dimension_numbers = #tpu.dot_dimension_numbers<[1], [0], [0], [1], [0, 0, 1, 1], [], []>} : vector<32x50xf32>, vector<50x32xf32>, vector<32x32xf32> -> vector<32x32xf32>
    %c0_4 = arith.constant 0 : index
    %c0_5 = arith.constant 0 : index
    %9 = vector.load %arg3[%c0_4, %c0_5] : memref<32x32xf32, #tpu.memory_space<vmem>>, vector<32x32xf32>
    %10 = arith.addf %8, %9 : vector<32x32xf32>
    %c0_6 = arith.constant 0 : index
    %c0_7 = arith.constant 0 : index
    %11 = vector.load %arg5[%c0_6, %c0_7] : memref<1x96xf32, #tpu.memory_space<vmem>>, vector<1x96xf32>
    %12 = vector.shape_cast %11 : vector<1x96xf32> to vector<1x96xf32>
    %13 = vector.broadcast %12 : vector<1x96xf32> to vector<32x96xf32>
    %c0_8 = arith.constant 0 : index
    %c0_9 = arith.constant 0 : index
    %14 = vector.load %arg7[%c0_8, %c0_9] : memref<1x32xf32, #tpu.memory_space<vmem>>, vector<1x32xf32>
    %15 = vector.shape_cast %14 : vector<1x32xf32> to vector<1x32xf32>
    %16 = vector.broadcast %15 : vector<1x32xf32> to vector<32x32xf32>
    %c0_10 = arith.constant 0 : index
    %c0_11 = arith.constant 0 : index
    %17 = vector.load %arg9[%c0_10, %c0_11] : memref<1x64xf32, #tpu.memory_space<vmem>>, vector<1x64xf32>
    %18 = vector.shape_cast %17 : vector<1x64xf32> to vector<1x64xf32>
    %19 = vector.broadcast %18 : vector<1x64xf32> to vector<32x64xf32>
    %c0_12 = arith.constant 0 : index
    %c0_13 = arith.constant 0 : index
    %20 = vector.load %arg11[%c0_12, %c0_13] : memref<1x32xf32, #tpu.memory_space<vmem>>, vector<1x32xf32>
    %21 = vector.shape_cast %20 : vector<1x32xf32> to vector<1x32xf32>
    %22 = vector.broadcast %21 : vector<1x32xf32> to vector<32x32xf32>
    %c0_14 = arith.constant 0 : index
    %c0_15 = arith.constant 0 : index
    %23 = vector.load %arg12[%c0_14, %c0_15] : memref<4x32xf32, #tpu.memory_space<vmem>>, vector<4x32xf32>
    %24 = vector.extract_strided_slice %23 {offsets = [0, 0], sizes = [1, 32], strides = [1, 1]} : vector<4x32xf32> to vector<1x32xf32>
    %25 = vector.shape_cast %24 : vector<1x32xf32> to vector<1x32xf32>
    %26 = vector.broadcast %25 : vector<1x32xf32> to vector<32x32xf32>
    %27 = vector.extract_strided_slice %23 {offsets = [1, 0], sizes = [1, 32], strides = [1, 1]} : vector<4x32xf32> to vector<1x32xf32>
    %28 = vector.shape_cast %27 : vector<1x32xf32> to vector<1x32xf32>
    %29 = vector.broadcast %28 : vector<1x32xf32> to vector<32x32xf32>
    %30 = vector.extract_strided_slice %23 {offsets = [2, 0], sizes = [1, 32], strides = [1, 1]} : vector<4x32xf32> to vector<1x32xf32>
    %31 = vector.shape_cast %30 : vector<1x32xf32> to vector<1x32xf32>
    %32 = vector.broadcast %31 : vector<1x32xf32> to vector<32x32xf32>
    %33 = vector.extract_strided_slice %23 {offsets = [3, 0], sizes = [1, 32], strides = [1, 1]} : vector<4x32xf32> to vector<1x32xf32>
    %34 = vector.shape_cast %33 : vector<1x32xf32> to vector<1x32xf32>
    %35 = vector.broadcast %34 : vector<1x32xf32> to vector<32x32xf32>
    %c0_16 = arith.constant 0 : index
    %c0_17 = arith.constant 0 : index
    %36 = vector.load %arg4[%c0_16, %c0_17] : memref<32x96xf32, #tpu.memory_space<vmem>>, vector<32x96xf32>
    %cst_18 = arith.constant dense<0.000000e+00> : vector<32x96xf32>
    %37 = tpu.matmul %10, %36, %cst_18 {dimension_numbers = #tpu.dot_dimension_numbers<[1], [0], [0], [1], [0, 0, 1, 1], [], []>} : vector<32x32xf32>, vector<32x96xf32>, vector<32x96xf32> -> vector<32x96xf32>
    %38 = arith.addf %37, %13 : vector<32x96xf32>
    %39 = vector.extract_strided_slice %38 {offsets = [0, 0], sizes = [32, 32], strides = [1, 1]} : vector<32x96xf32> to vector<32x32xf32>
    %40 = vector.shape_cast %39 : vector<32x32xf32> to vector<4x8x32xf32>
    %41 = vector.extract_strided_slice %38 {offsets = [0, 32], sizes = [32, 32], strides = [1, 1]} : vector<32x96xf32> to vector<32x32xf32>
    %42 = vector.shape_cast %41 : vector<32x32xf32> to vector<4x8x32xf32>
    %43 = vector.extract_strided_slice %38 {offsets = [0, 64], sizes = [32, 32], strides = [1, 1]} : vector<32x96xf32> to vector<32x32xf32>
    %44 = vector.shape_cast %43 : vector<32x32xf32> to vector<4x8x32xf32>
    "tpu.trace_start"() <{level = 10 : i32, message = "ntd,nsd->nts"}> : () -> ()
    %cst_19 = arith.constant dense<0.000000e+00> : vector<4x8x8xf32>
    %45 = tpu.matmul %40, %42, %cst_19 {dimension_numbers = #tpu.dot_dimension_numbers<[2], [2], [1], [1], [0, 0, 0, 1, 1, 1], [0], [0]>} : vector<4x8x32xf32>, vector<4x8x32xf32>, vector<4x8x8xf32> -> vector<4x8x8xf32>
    "tpu.trace_stop"() : () -> ()
    %cst_20 = arith.constant 0.176776692 : f32
    %46 = vector.broadcast %cst_20 : f32 to vector<4x8x8xf32>
    %47 = arith.mulf %45, %46 : vector<4x8x8xf32>
    %cst_21 = arith.constant dense<0xFF800000> : vector<4x8xf32>
    %48 = vector.multi_reduction <maximumf>, %47, %cst_21 [2] : vector<4x8x8xf32> to vector<4x8xf32>
    %49 = vector.shape_cast %48 : vector<4x8xf32> to vector<4x8x1xf32>
    %50 = vector.broadcast %49 : vector<4x8x1xf32> to vector<4x8x8xf32>
    %51 = arith.subf %47, %50 : vector<4x8x8xf32>
    %52 = math.exp %51 : vector<4x8x8xf32>
    %cst_22 = arith.constant dense<0.000000e+00> : vector<4x8xf32>
    %53 = vector.multi_reduction <add>, %52, %cst_22 [2] : vector<4x8x8xf32> to vector<4x8xf32>
    %54 = vector.shape_cast %53 : vector<4x8xf32> to vector<4x8x1xf32>
    %55 = tpu.reciprocal %54 {approx = true} : vector<4x8x1xf32> -> vector<4x8x1xf32>
    %56 = vector.broadcast %55 : vector<4x8x1xf32> to vector<4x8x8xf32>
    %57 = arith.mulf %52, %56 : vector<4x8x8xf32>
    "tpu.trace_start"() <{level = 10 : i32, message = "nts,nsd->ntd"}> : () -> ()
    %cst_23 = arith.constant dense<0.000000e+00> : vector<4x8x32xf32>
    %58 = tpu.matmul %57, %44, %cst_23 {dimension_numbers = #tpu.dot_dimension_numbers<[2], [1], [1], [2], [0, 0, 0, 1, 1, 2], [0], [0]>} : vector<4x8x8xf32>, vector<4x8x32xf32>, vector<4x8x32xf32> -> vector<4x8x32xf32>
    "tpu.trace_stop"() : () -> ()
    %59 = vector.shape_cast %58 : vector<4x8x32xf32> to vector<32x32xf32>
    %c0_24 = arith.constant 0 : index
    %c0_25 = arith.constant 0 : index
    %60 = vector.load %arg6[%c0_24, %c0_25] : memref<32x32xf32, #tpu.memory_space<vmem>>, vector<32x32xf32>
    %cst_26 = arith.constant dense<0.000000e+00> : vector<32x32xf32>
    %61 = tpu.matmul %59, %60, %cst_26 {dimension_numbers = #tpu.dot_dimension_numbers<[1], [0], [0], [1], [0, 0, 1, 1], [], []>} : vector<32x32xf32>, vector<32x32xf32>, vector<32x32xf32> -> vector<32x32xf32>
    %62 = arith.addf %61, %16 : vector<32x32xf32>
    %63 = arith.addf %10, %62 : vector<32x32xf32>
    %cst_27 = arith.constant dense<0.000000e+00> : vector<32xf32>
    %64 = vector.multi_reduction <add>, %63, %cst_27 [1] : vector<32x32xf32> to vector<32xf32>
    %65 = vector.shape_cast %64 : vector<32xf32> to vector<32x1xf32>
    %cst_28 = arith.constant 3.200000e+01 : f32
    %66 = vector.broadcast %cst_28 : f32 to vector<32x1xf32>
    %67 = arith.divf %65, %66 : vector<32x1xf32>
    %68 = vector.broadcast %67 : vector<32x1xf32> to vector<32x32xf32>
    %69 = arith.subf %63, %68 : vector<32x32xf32>
    %70 = arith.mulf %69, %69 : vector<32x32xf32>
    %cst_29 = arith.constant dense<0.000000e+00> : vector<32xf32>
    %71 = vector.multi_reduction <add>, %70, %cst_29 [1] : vector<32x32xf32> to vector<32xf32>
    %72 = vector.shape_cast %71 : vector<32xf32> to vector<32x1xf32>
    %cst_30 = arith.constant 3.200000e+01 : f32
    %73 = vector.broadcast %cst_30 : f32 to vector<32x1xf32>
    %74 = arith.divf %72, %73 : vector<32x1xf32>
    %75 = vector.broadcast %67 : vector<32x1xf32> to vector<32x32xf32>
    %76 = arith.subf %63, %75 : vector<32x32xf32>
    %cst_31 = arith.constant 9.99999996E-13 : f32
    %77 = vector.broadcast %cst_31 : f32 to vector<32x1xf32>
    %78 = arith.addf %74, %77 : vector<32x1xf32>
    %79 = math.rsqrt %78 : vector<32x1xf32>
    %80 = vector.broadcast %79 : vector<32x1xf32> to vector<32x32xf32>
    %81 = arith.mulf %76, %80 : vector<32x32xf32>
    %82 = arith.mulf %81, %26 : vector<32x32xf32>
    %83 = arith.addf %82, %29 : vector<32x32xf32>
    %c0_32 = arith.constant 0 : index
    %c0_33 = arith.constant 0 : index
    %84 = vector.load %arg8[%c0_32, %c0_33] : memref<32x64xf32, #tpu.memory_space<vmem>>, vector<32x64xf32>
    %cst_34 = arith.constant dense<0.000000e+00> : vector<32x64xf32>
    %85 = tpu.matmul %83, %84, %cst_34 {dimension_numbers = #tpu.dot_dimension_numbers<[1], [0], [0], [1], [0, 0, 1, 1], [], []>} : vector<32x32xf32>, vector<32x64xf32>, vector<32x64xf32> -> vector<32x64xf32>
    %86 = arith.addf %85, %19 : vector<32x64xf32>
    %87 = arith.mulf %86, %86 : vector<32x64xf32>
    %88 = arith.mulf %86, %87 : vector<32x64xf32>
    %cst_35 = arith.constant 4.471500e-02 : f32
    %89 = vector.broadcast %cst_35 : f32 to vector<32x64xf32>
    %90 = arith.mulf %89, %88 : vector<32x64xf32>
    %91 = arith.addf %86, %90 : vector<32x64xf32>
    %cst_36 = arith.constant 0.797884583 : f32
    %92 = vector.broadcast %cst_36 : f32 to vector<32x64xf32>
    %93 = arith.mulf %92, %91 : vector<32x64xf32>
    %94 = math.tanh %93 : vector<32x64xf32>
    %cst_37 = arith.constant 1.000000e+00 : f32
    %95 = vector.broadcast %cst_37 : f32 to vector<32x64xf32>
    %96 = arith.addf %95, %94 : vector<32x64xf32>
    %cst_38 = arith.constant 5.000000e-01 : f32
    %97 = vector.broadcast %cst_38 : f32 to vector<32x64xf32>
    %98 = arith.mulf %97, %96 : vector<32x64xf32>
    %99 = arith.mulf %86, %98 : vector<32x64xf32>
    %c0_39 = arith.constant 0 : index
    %c0_40 = arith.constant 0 : index
    %100 = vector.load %arg10[%c0_39, %c0_40] : memref<64x32xf32, #tpu.memory_space<vmem>>, vector<64x32xf32>
    %cst_41 = arith.constant dense<0.000000e+00> : vector<32x32xf32>
    %101 = tpu.matmul %99, %100, %cst_41 {dimension_numbers = #tpu.dot_dimension_numbers<[1], [0], [0], [1], [0, 0, 1, 1], [], []>} : vector<32x64xf32>, vector<64x32xf32>, vector<32x32xf32> -> vector<32x32xf32>
    %102 = arith.addf %101, %22 : vector<32x32xf32>
    %103 = arith.addf %83, %102 : vector<32x32xf32>
    %cst_42 = arith.constant dense<0.000000e+00> : vector<32xf32>
    %104 = vector.multi_reduction <add>, %103, %cst_42 [1] : vector<32x32xf32> to vector<32xf32>
    %105 = vector.shape_cast %104 : vector<32xf32> to vector<32x1xf32>
    %cst_43 = arith.constant 3.200000e+01 : f32
    %106 = vector.broadcast %cst_43 : f32 to vector<32x1xf32>
    %107 = arith.divf %105, %106 : vector<32x1xf32>
    %108 = vector.broadcast %107 : vector<32x1xf32> to vector<32x32xf32>
    %109 = arith.subf %103, %108 : vector<32x32xf32>
    %110 = arith.mulf %109, %109 : vector<32x32xf32>
    %cst_44 = arith.constant dense<0.000000e+00> : vector<32xf32>
    %111 = vector.multi_reduction <add>, %110, %cst_44 [1] : vector<32x32xf32> to vector<32xf32>
    %112 = vector.shape_cast %111 : vector<32xf32> to vector<32x1xf32>
    %cst_45 = arith.constant 3.200000e+01 : f32
    %113 = vector.broadcast %cst_45 : f32 to vector<32x1xf32>
    %114 = arith.divf %112, %113 : vector<32x1xf32>
    %115 = vector.broadcast %107 : vector<32x1xf32> to vector<32x32xf32>
    %116 = arith.subf %103, %115 : vector<32x32xf32>
    %cst_46 = arith.constant 9.99999996E-13 : f32
    %117 = vector.broadcast %cst_46 : f32 to vector<32x1xf32>
    %118 = arith.addf %114, %117 : vector<32x1xf32>
    %119 = math.rsqrt %118 : vector<32x1xf32>
    %120 = vector.broadcast %119 : vector<32x1xf32> to vector<32x32xf32>
    %121 = arith.mulf %116, %120 : vector<32x32xf32>
    %122 = arith.mulf %121, %32 : vector<32x32xf32>
    %123 = arith.addf %122, %35 : vector<32x32xf32>
    %c0_47 = arith.constant 0 : index
    %c0_48 = arith.constant 0 : index
    %124 = vector.load %arg4[%c0_47, %c0_48] : memref<32x96xf32, #tpu.memory_space<vmem>>, vector<32x96xf32>
    %cst_49 = arith.constant dense<0.000000e+00> : vector<32x96xf32>
    %125 = tpu.matmul %123, %124, %cst_49 {dimension_numbers = #tpu.dot_dimension_numbers<[1], [0], [0], [1], [0, 0, 1, 1], [], []>} : vector<32x32xf32>, vector<32x96xf32>, vector<32x96xf32> -> vector<32x96xf32>
    %126 = arith.addf %125, %13 : vector<32x96xf32>
    %127 = vector.extract_strided_slice %126 {offsets = [0, 0], sizes = [32, 32], strides = [1, 1]} : vector<32x96xf32> to vector<32x32xf32>
    %128 = vector.shape_cast %127 : vector<32x32xf32> to vector<4x8x32xf32>
    %129 = vector.extract_strided_slice %126 {offsets = [0, 32], sizes = [32, 32], strides = [1, 1]} : vector<32x96xf32> to vector<32x32xf32>
    %130 = vector.shape_cast %129 : vector<32x32xf32> to vector<4x8x32xf32>
    %131 = vector.extract_strided_slice %126 {offsets = [0, 64], sizes = [32, 32], strides = [1, 1]} : vector<32x96xf32> to vector<32x32xf32>
    %132 = vector.shape_cast %131 : vector<32x32xf32> to vector<4x8x32xf32>
    "tpu.trace_start"() <{level = 10 : i32, message = "ntd,nsd->nts"}> : () -> ()
    %cst_50 = arith.constant dense<0.000000e+00> : vector<4x8x8xf32>
    %133 = tpu.matmul %128, %130, %cst_50 {dimension_numbers = #tpu.dot_dimension_numbers<[2], [2], [1], [1], [0, 0, 0, 1, 1, 1], [0], [0]>} : vector<4x8x32xf32>, vector<4x8x32xf32>, vector<4x8x8xf32> -> vector<4x8x8xf32>
    "tpu.trace_stop"() : () -> ()
    %cst_51 = arith.constant 0.176776692 : f32
    %134 = vector.broadcast %cst_51 : f32 to vector<4x8x8xf32>
    %135 = arith.mulf %133, %134 : vector<4x8x8xf32>
    %cst_52 = arith.constant dense<0xFF800000> : vector<4x8xf32>
    %136 = vector.multi_reduction <maximumf>, %135, %cst_52 [2] : vector<4x8x8xf32> to vector<4x8xf32>
    %137 = vector.shape_cast %136 : vector<4x8xf32> to vector<4x8x1xf32>
    %138 = vector.broadcast %137 : vector<4x8x1xf32> to vector<4x8x8xf32>
    %139 = arith.subf %135, %138 : vector<4x8x8xf32>
    %140 = math.exp %139 : vector<4x8x8xf32>
    %cst_53 = arith.constant dense<0.000000e+00> : vector<4x8xf32>
    %141 = vector.multi_reduction <add>, %140, %cst_53 [2] : vector<4x8x8xf32> to vector<4x8xf32>
    %142 = vector.shape_cast %141 : vector<4x8xf32> to vector<4x8x1xf32>
    %143 = tpu.reciprocal %142 {approx = true} : vector<4x8x1xf32> -> vector<4x8x1xf32>
    %144 = vector.broadcast %143 : vector<4x8x1xf32> to vector<4x8x8xf32>
    %145 = arith.mulf %140, %144 : vector<4x8x8xf32>
    "tpu.trace_start"() <{level = 10 : i32, message = "nts,nsd->ntd"}> : () -> ()
    %cst_54 = arith.constant dense<0.000000e+00> : vector<4x8x32xf32>
    %146 = tpu.matmul %145, %132, %cst_54 {dimension_numbers = #tpu.dot_dimension_numbers<[2], [1], [1], [2], [0, 0, 0, 1, 1, 2], [0], [0]>} : vector<4x8x8xf32>, vector<4x8x32xf32>, vector<4x8x32xf32> -> vector<4x8x32xf32>
    "tpu.trace_stop"() : () -> ()
    %147 = vector.shape_cast %146 : vector<4x8x32xf32> to vector<32x32xf32>
    %c0_55 = arith.constant 0 : index
    %c0_56 = arith.constant 0 : index
    %148 = vector.load %arg6[%c0_55, %c0_56] : memref<32x32xf32, #tpu.memory_space<vmem>>, vector<32x32xf32>
    %cst_57 = arith.constant dense<0.000000e+00> : vector<32x32xf32>
    %149 = tpu.matmul %147, %148, %cst_57 {dimension_numbers = #tpu.dot_dimension_numbers<[1], [0], [0], [1], [0, 0, 1, 1], [], []>} : vector<32x32xf32>, vector<32x32xf32>, vector<32x32xf32> -> vector<32x32xf32>
    %150 = arith.addf %149, %16 : vector<32x32xf32>
    %151 = arith.addf %123, %150 : vector<32x32xf32>
    %cst_58 = arith.constant dense<0.000000e+00> : vector<32xf32>
    %152 = vector.multi_reduction <add>, %151, %cst_58 [1] : vector<32x32xf32> to vector<32xf32>
    %153 = vector.shape_cast %152 : vector<32xf32> to vector<32x1xf32>
    %cst_59 = arith.constant 3.200000e+01 : f32
    %154 = vector.broadcast %cst_59 : f32 to vector<32x1xf32>
    %155 = arith.divf %153, %154 : vector<32x1xf32>
    %156 = vector.broadcast %155 : vector<32x1xf32> to vector<32x32xf32>
    %157 = arith.subf %151, %156 : vector<32x32xf32>
    %158 = arith.mulf %157, %157 : vector<32x32xf32>
    %cst_60 = arith.constant dense<0.000000e+00> : vector<32xf32>
    %159 = vector.multi_reduction <add>, %158, %cst_60 [1] : vector<32x32xf32> to vector<32xf32>
    %160 = vector.shape_cast %159 : vector<32xf32> to vector<32x1xf32>
    %cst_61 = arith.constant 3.200000e+01 : f32
    %161 = vector.broadcast %cst_61 : f32 to vector<32x1xf32>
    %162 = arith.divf %160, %161 : vector<32x1xf32>
    %163 = vector.broadcast %155 : vector<32x1xf32> to vector<32x32xf32>
    %164 = arith.subf %151, %163 : vector<32x32xf32>
    %cst_62 = arith.constant 9.99999996E-13 : f32
    %165 = vector.broadcast %cst_62 : f32 to vector<32x1xf32>
    %166 = arith.addf %162, %165 : vector<32x1xf32>
    %167 = math.rsqrt %166 : vector<32x1xf32>
    %168 = vector.broadcast %167 : vector<32x1xf32> to vector<32x32xf32>
    %169 = arith.mulf %164, %168 : vector<32x32xf32>
    %170 = arith.mulf %169, %26 : vector<32x32xf32>
    %171 = arith.addf %170, %29 : vector<32x32xf32>
    %c0_63 = arith.constant 0 : index
    %c0_64 = arith.constant 0 : index
    %172 = vector.load %arg8[%c0_63, %c0_64] : memref<32x64xf32, #tpu.memory_space<vmem>>, vector<32x64xf32>
    %cst_65 = arith.constant dense<0.000000e+00> : vector<32x64xf32>
    %173 = tpu.matmul %171, %172, %cst_65 {dimension_numbers = #tpu.dot_dimension_numbers<[1], [0], [0], [1], [0, 0, 1, 1], [], []>} : vector<32x32xf32>, vector<32x64xf32>, vector<32x64xf32> -> vector<32x64xf32>
    %174 = arith.addf %173, %19 : vector<32x64xf32>
    %175 = arith.mulf %174, %174 : vector<32x64xf32>
    %176 = arith.mulf %174, %175 : vector<32x64xf32>
    %cst_66 = arith.constant 4.471500e-02 : f32
    %177 = vector.broadcast %cst_66 : f32 to vector<32x64xf32>
    %178 = arith.mulf %177, %176 : vector<32x64xf32>
    %179 = arith.addf %174, %178 : vector<32x64xf32>
    %cst_67 = arith.constant 0.797884583 : f32
    %180 = vector.broadcast %cst_67 : f32 to vector<32x64xf32>
    %181 = arith.mulf %180, %179 : vector<32x64xf32>
    %182 = math.tanh %181 : vector<32x64xf32>
    %cst_68 = arith.constant 1.000000e+00 : f32
    %183 = vector.broadcast %cst_68 : f32 to vector<32x64xf32>
    %184 = arith.addf %183, %182 : vector<32x64xf32>
    %cst_69 = arith.constant 5.000000e-01 : f32
    %185 = vector.broadcast %cst_69 : f32 to vector<32x64xf32>
    %186 = arith.mulf %185, %184 : vector<32x64xf32>
    %187 = arith.mulf %174, %186 : vector<32x64xf32>
    %c0_70 = arith.constant 0 : index
    %c0_71 = arith.constant 0 : index
    %188 = vector.load %arg10[%c0_70, %c0_71] : memref<64x32xf32, #tpu.memory_space<vmem>>, vector<64x32xf32>
    %cst_72 = arith.constant dense<0.000000e+00> : vector<32x32xf32>
    %189 = tpu.matmul %187, %188, %cst_72 {dimension_numbers = #tpu.dot_dimension_numbers<[1], [0], [0], [1], [0, 0, 1, 1], [], []>} : vector<32x64xf32>, vector<64x32xf32>, vector<32x32xf32> -> vector<32x32xf32>
    %190 = arith.addf %189, %22 : vector<32x32xf32>
    %191 = arith.addf %171, %190 : vector<32x32xf32>
    %cst_73 = arith.constant dense<0.000000e+00> : vector<32xf32>
    %192 = vector.multi_reduction <add>, %191, %cst_73 [1] : vector<32x32xf32> to vector<32xf32>
    %193 = vector.shape_cast %192 : vector<32xf32> to vector<32x1xf32>
    %cst_74 = arith.constant 3.200000e+01 : f32
    %194 = vector.broadcast %cst_74 : f32 to vector<32x1xf32>
    %195 = arith.divf %193, %194 : vector<32x1xf32>
    %196 = vector.broadcast %195 : vector<32x1xf32> to vector<32x32xf32>
    %197 = arith.subf %191, %196 : vector<32x32xf32>
    %198 = arith.mulf %197, %197 : vector<32x32xf32>
    %cst_75 = arith.constant dense<0.000000e+00> : vector<32xf32>
    %199 = vector.multi_reduction <add>, %198, %cst_75 [1] : vector<32x32xf32> to vector<32xf32>
    %200 = vector.shape_cast %199 : vector<32xf32> to vector<32x1xf32>
    %cst_76 = arith.constant 3.200000e+01 : f32
    %201 = vector.broadcast %cst_76 : f32 to vector<32x1xf32>
    %202 = arith.divf %200, %201 : vector<32x1xf32>
    %203 = vector.broadcast %195 : vector<32x1xf32> to vector<32x32xf32>
    %204 = arith.subf %191, %203 : vector<32x32xf32>
    %cst_77 = arith.constant 9.99999996E-13 : f32
    %205 = vector.broadcast %cst_77 : f32 to vector<32x1xf32>
    %206 = arith.addf %202, %205 : vector<32x1xf32>
    %207 = math.rsqrt %206 : vector<32x1xf32>
    %208 = vector.broadcast %207 : vector<32x1xf32> to vector<32x32xf32>
    %209 = arith.mulf %204, %208 : vector<32x32xf32>
    %210 = arith.mulf %209, %32 : vector<32x32xf32>
    %211 = arith.addf %210, %35 : vector<32x32xf32>
    %212 = vector.shape_cast %211 : vector<32x32xf32> to vector<4x8x32xf32>
    %213 = vector.extract_strided_slice %212 {offsets = [0, 0, 0], sizes = [4, 1, 32], strides = [1, 1, 1]} : vector<4x8x32xf32> to vector<4x1x32xf32>
    %214 = vector.shape_cast %213 : vector<4x1x32xf32> to vector<4x32xf32>
    %c0_78 = arith.constant 0 : index
    %c0_79 = arith.constant 0 : index
    %215 = vector.load %arg13[%c0_78, %c0_79] : memref<32x32xf32, #tpu.memory_space<vmem>>, vector<32x32xf32>
    %cst_80 = arith.constant dense<0.000000e+00> : vector<4x32xf32>
    %216 = tpu.matmul %214, %215, %cst_80 {dimension_numbers = #tpu.dot_dimension_numbers<[1], [0], [0], [1], [0, 0, 1, 1], [], []>} : vector<4x32xf32>, vector<32x32xf32>, vector<4x32xf32> -> vector<4x32xf32>
    %c0_81 = arith.constant 0 : index
    %c0_82 = arith.constant 0 : index
    %217 = vector.load %arg14[%c0_81, %c0_82] : memref<1x32xf32, #tpu.memory_space<vmem>>, vector<1x32xf32>
    %218 = vector.broadcast %217 : vector<1x32xf32> to vector<4x32xf32>
    %219 = arith.addf %216, %218 : vector<4x32xf32>
    %220 = math.tanh %219 : vector<4x32xf32>
    %c0_83 = arith.constant 0 : index
    %c0_84 = arith.constant 0 : index
    %221 = vector.load %arg15[%c0_83, %c0_84] : memref<32x32xf32, #tpu.memory_space<vmem>>, vector<32x32xf32>
    %cst_85 = arith.constant dense<0.000000e+00> : vector<4x32xf32>
    %222 = tpu.matmul %220, %221, %cst_85 {dimension_numbers = #tpu.dot_dimension_numbers<[1], [0], [0], [1], [0, 0, 1, 1], [], []>} : vector<4x32xf32>, vector<32x32xf32>, vector<4x32xf32> -> vector<4x32xf32>
    %c0_86 = arith.constant 0 : index
    %c0_87 = arith.constant 0 : index
    %223 = vector.load %arg16[%c0_86, %c0_87] : memref<1x32xf32, #tpu.memory_space<vmem>>, vector<1x32xf32>
    %224 = vector.broadcast %223 : vector<1x32xf32> to vector<4x32xf32>
    %225 = arith.addf %222, %224 : vector<4x32xf32>
    %c0_88 = arith.constant 0 : index
    %c0_89 = arith.constant 0 : index
    %226 = vector.load %arg17[%c0_88, %c0_89] : memref<1x32xf32, #tpu.memory_space<vmem>>, vector<1x32xf32>
    %cst_90 = arith.constant dense<0.000000e+00> : vector<1x4xf32>
    %227 = tpu.matmul %226, %225, %cst_90 {dimension_numbers = #tpu.dot_dimension_numbers<[1], [1], [0], [0], [0, 0, 1, 0], [], []>} : vector<1x32xf32>, vector<4x32xf32>, vector<1x4xf32> -> vector<1x4xf32>
    %c0_91 = arith.constant 0 : index
    %c0_92 = arith.constant 0 : index
    %228 = memref.load %arg18[%c0_91, %c0_92] : memref<1x1xf32, #tpu.memory_space<smem>>
    %229 = vector.broadcast %228 : f32 to vector<1x4xf32>
    %230 = arith.addf %227, %229 : vector<1x4xf32>
    %c0_93 = arith.constant 0 : index
    %c0_94 = arith.constant 0 : index
    %c0_95 = arith.constant 0 : index
    %231 = vector.load %arg19[%c0_93, %c0_94, %c0_95] : memref<1x1x4xf32, #tpu.memory_space<vmem>>, vector<1x1x4xf32>
    %232 = vector.shape_cast %231 : vector<1x1x4xf32> to vector<1x4xf32>
    %233 = vector.shape_cast %230 : vector<1x4xf32> to vector<1x1x4xf32>
    tpu.vector_store %arg19[%c0_93, %c0_94, %c0_95], %233 {strides = array<i32>} : memref<1x1x4xf32, #tpu.memory_space<vmem>>, vector<1x1x4xf32>,
    return
  }
  func.func @transform_0(%arg0: i32) -> (i32, i32, i32) {
    %c0_i32 = arith.constant 0 : i32
    %c0_i32_0 = arith.constant 0 : i32
    %c0_i32_1 = arith.constant 0 : i32
    return %arg0, %c0_i32, %c0_i32_0 : i32, i32, i32
  }
  func.func @transform_1(%arg0: i32) -> (i32, i32) {
    %c0_i32 = arith.constant 0 : i32
    %c0_i32_0 = arith.constant 0 : i32
    %c0_i32_1 = arith.constant 0 : i32
    return %c0_i32, %c0_i32_0 : i32, i32
  }
  func.func @transform_2(%arg0: i32) -> (i32, i32) {
    %c0_i32 = arith.constant 0 : i32
    %c0_i32_0 = arith.constant 0 : i32
    %c0_i32_1 = arith.constant 0 : i32
    return %c0_i32, %c0_i32_0 : i32, i32
  }
  func.func @transform_3(%arg0: i32) -> (i32, i32) {
    %c0_i32 = arith.constant 0 : i32
    %c0_i32_0 = arith.constant 0 : i32
    %c0_i32_1 = arith.constant 0 : i32
    return %c0_i32, %c0_i32_0 : i32, i32
  }
  func.func @transform_4(%arg0: i32) -> (i32, i32) {
    %c0_i32 = arith.constant 0 : i32
    %c0_i32_0 = arith.constant 0 : i32
    %c0_i32_1 = arith.constant 0 : i32
    return %c0_i32, %c0_i32_0 : i32, i32
  }
  func.func @transform_5(%arg0: i32) -> (i32, i32) {
    %c0_i32 = arith.constant 0 : i32
    %c0_i32_0 = arith.constant 0 : i32
    %c0_i32_1 = arith.constant 0 : i32
    return %c0_i32, %c0_i32_0 : i32, i32
  }
  func.func @transform_6(%arg0: i32) -> (i32, i32) {
    %c0_i32 = arith.constant 0 : i32
    %c0_i32_0 = arith.constant 0 : i32
    %c0_i32_1 = arith.constant 0 : i32
    return %c0_i32, %c0_i32_0 : i32, i32
  }
  func.func @transform_7(%arg0: i32) -> (i32, i32) {
    %c0_i32 = arith.constant 0 : i32
    %c0_i32_0 = arith.constant 0 : i32
    %c0_i32_1 = arith.constant 0 : i32
    return %c0_i32, %c0_i32_0 : i32, i32
  }
  func.func @transform_8(%arg0: i32) -> (i32, i32) {
    %c0_i32 = arith.constant 0 : i32
    %c0_i32_0 = arith.constant 0 : i32
    %c0_i32_1 = arith.constant 0 : i32
    return %c0_i32, %c0_i32_0 : i32, i32
  }
  func.func @transform_9(%arg0: i32) -> (i32, i32) {
    %c0_i32 = arith.constant 0 : i32
    %c0_i32_0 = arith.constant 0 : i32
    %c0_i32_1 = arith.constant 0 : i32
    return %c0_i32, %c0_i32_0 : i32, i32
  }
  func.func @transform_10(%arg0: i32) -> (i32, i32) {
    %c0_i32 = arith.constant 0 : i32
    %c0_i32_0 = arith.constant 0 : i32
    %c0_i32_1 = arith.constant 0 : i32
    return %c0_i32, %c0_i32_0 : i32, i32
  }
  func.func @transform_11(%arg0: i32) -> (i32, i32) {
    %c0_i32 = arith.constant 0 : i32
    %c0_i32_0 = arith.constant 0 : i32
    %c0_i32_1 = arith.constant 0 : i32
    return %c0_i32, %c0_i32_0 : i32, i32
  }
  func.func @transform_12(%arg0: i32) -> (i32, i32) {
    %c0_i32 = arith.constant 0 : i32
    %c0_i32_0 = arith.constant 0 : i32
    %c0_i32_1 = arith.constant 0 : i32
    return %c0_i32, %c0_i32_0 : i32, i32
  }
  func.func @transform_13(%arg0: i32) -> (i32, i32) {
    %c0_i32 = arith.constant 0 : i32
    %c0_i32_0 = arith.constant 0 : i32
    %c0_i32_1 = arith.constant 0 : i32
    return %c0_i32, %c0_i32_0 : i32, i32
  }
  func.func @transform_14(%arg0: i32) -> (i32, i32) {
    %c0_i32 = arith.constant 0 : i32
    %c0_i32_0 = arith.constant 0 : i32
    %c0_i32_1 = arith.constant 0 : i32
    return %c0_i32, %c0_i32_0 : i32, i32
  }
  func.func @transform_15(%arg0: i32) -> (i32, i32) {
    %c0_i32 = arith.constant 0 : i32
    %c0_i32_0 = arith.constant 0 : i32
    %c0_i32_1 = arith.constant 0 : i32
    return %c0_i32, %c0_i32_0 : i32, i32
  }
  func.func @transform_16(%arg0: i32) -> (i32, i32) {
    %c0_i32 = arith.constant 0 : i32
    %c0_i32_0 = arith.constant 0 : i32
    %c0_i32_1 = arith.constant 0 : i32
    return %c0_i32, %c0_i32_0 : i32, i32
  }
  func.func @transform_17(%arg0: i32) -> (i32, i32) {
    %c0_i32 = arith.constant 0 : i32
    %c0_i32_0 = arith.constant 0 : i32
    %c0_i32_1 = arith.constant 0 : i32
    return %c0_i32, %c0_i32_0 : i32, i32
  }
  func.func @transform_18(%arg0: i32) -> (i32, i32, i32) {
    %c0_i32 = arith.constant 0 : i32
    %c0_i32_0 = arith.constant 0 : i32
    %c0_i32_1 = arith.constant 0 : i32
    return %arg0, %c0_i32, %c0_i32_0 : i32, i32, i32
  }
}

</mosaic_0001>

<bundles_post_ra>
// kernel: tpu_custom_call.1
= control target key start
LH: loop header
LB: loop body
LE: loop exit
PB: predicated region body
PF: predicated region fallthrough
CT: control target
= control target key end

     0   :  { %s5099_s0 = inlined_call_operand.vmem [shape: s32[2,32,1], index: 0, kind: input, shape index: {}]   ;;  %s5100_s1 = inlined_call_operand.vmem [shape: f32[50,32], index: 1, kind: input, shape index: {}]   ;;  %s5101_s2 = inlined_call_operand.vmem [shape: f32[32,32], index: 2, kind: input, shape index: {}]   ;;  %s5102_s3 = inlined_call_operand.vmem [shape: f32[32,96], index: 3, kind: input, shape index: {}]   ;;  %s5103_s4 = inlined_call_operand.vmem [shape: f32[1,96], index: 4, kind: input, shape index: {}]   ;;  %s5104_s5 = inlined_call_operand.vmem [shape: f32[32,32], index: 5, kind: input, shape index: {}]   ;;  %s5105_s6 = inlined_call_operand.vmem [shape: f32[1,32], index: 6, kind: input, shape index: {}]   ;;  %s5106_s7 = inlined_call_operand.vmem [shape: f32[32,64], index: 7, kind: input, shape index: {}]   ;;  %s5107_s8 = inlined_call_operand.vmem [shape: f32[1,64], index: 8, kind: input, shape index: {}]   ;;  %s5108_s9 = inlined_call_operand.vmem [shape: f32[64,32], index: 9, kind: input, shape index: {}]   ;;  %s5109_s10 = inlined_call_operand.vmem [shape: f32[1,32], index: 10, kind: input, shape index: {}]   ;;  %s5110_s11 = inlined_call_operand.vmem [shape: f32[4,32], index: 11, kind: input, shape index: {}]   ;;  %s5111_s12 = inlined_call_operand.vmem [shape: f32[32,32], index: 12, kind: input, shape index: {}]   ;;  %s5112_s13 = inlined_call_operand.vmem [shape: f32[1,32], index: 13, kind: input, shape index: {}]   ;;  %s5113_s14 = inlined_call_operand.vmem [shape: f32[32,32], index: 14, kind: input, shape index: {}]   ;;  %s5114_s15 = inlined_call_operand.vmem [shape: f32[1,32], index: 15, kind: input, shape index: {}]   ;;  %s5115_s16 = inlined_call_operand.vmem [shape: f32[1,32], index: 16, kind: input, shape index: {}]   ;;  %s5116_s17 = inlined_call_operand.<no memory space> [shape: f32[1,1], index: 17, kind: input, shape index: {}]   ;;  %s5117_s18 = inlined_call_operand.hbm [shape: f32[2,1,4], index: 18, kind: output, shape index: {}]  }
   0x1   :  { %5125 = sst [smem:[#allocation11_spill]] %s5099_s0 }
   0x2   :  { %5126 = sst [smem:[#allocation12_spill]] %s5100_s1 }
   0x3   :  { %5127 = sst [smem:[#allocation13_spill]] %s5101_s2 }
   0x4   :  { %5128 = sst [smem:[#allocation14_spill]] %s5102_s3 }
   0x5   :  { %23 = sst [smem:[#allocation2]] %s5116_s17 }
   0x6   :  { %24 = vsyncpa [#allocation4], 0 }
   0x7   :  { %26 = vsyncpa [#allocation4 + $0x1], 0  ;;  %s4429_s29 = smov 0   ;;  %s4431_s30 = smov 0  }
   0x8   :  { %s4433_s0 = smov 0   ;;  %s4435_s19 = smov 0  }
   0x9 LB: > { %5129 = sst [smem:[#allocation6_spill]] %s4310_s29  ;;  %s4450_s17 = sadd.s32 4294967295, %s4322_s19   ;;  %s4322_s19 = sphi %s4435_s19, %s5142_s19   ;;  %s4318_s0 = sphi %s4433_s0, %s5144_s0   ;;  %s4314_s30 = sphi %s4431_s30, %s5146_s30   ;;  %s4310_s29 = sphi %s4429_s29, %s5145_s29  }
   0xa   : > { %5130 = sst [smem:[#allocation7_spill]] %s4318_s0  ;;  %s3560_s1 = sadd.s32 4294967294, %s4322_s19  }
   0xb   : > { %s4454_s20 = sadd.s32 1, %s4322_s19   ;;  %s422_s21 = sadd.s32 1, %s4318_s0 }
   0xc   : > { %5131 = sst [smem:[#allocation8_spill]] %s4454_s20  ;;  %s419_s22 = ssub.s32 %s4322_s19, %s4454_s20 }
   0xd   : > { %p432_p0 = scmp.ne.s32.totalorder %s4318_s0, %s4314_s30  ;;  %p420_p1 = scmp.eq.s32.totalorder %s419_s22, 0 }
   0xe   : > { %p433_p2 = scmp.eq.s32.totalorder %s4450_s17, 1  ;;  %p438_p3 = scmp.ne.s32.totalorder %s4314_s30, %s4310_s29 }
   0xf   : > { %p439_p4 = scmp.eq.s32.totalorder %s3560_s1, 1  ;;  %p3563_p7 = scmp.ge.s32.totalorder %s4322_s19, 1 }
  0x10   : > { %s4465_s2 = scalar_select %p420_p1, %s4318_s0, %s422_s21  }
  0x11   : > { %p4467_p5 = por %p433_p2, %p432_p0  ;;  %p4471_p6 = por %p439_p4, %p438_p3 }
  0x12   : > { %5132 = sst [smem:[#allocation9_spill]] %s4465_s2  ;;  %p516_p8 = scmp.lt.s32.totalorder %s4322_s19, 3 }
  0x13   : > { %s5134_s24 = scalar_select %p4471_p6, 1, 0 }
  0x14   : > { %p517_p9 = pnand %p3563_p7, %p516_p8 }
  0x15   : > { %5135 = sst [smem:[#allocation10_spill]] %s5134_s24  ;;  %p569_p10 = scmp.lt.s32.totalorder (!%p517_p9), %s4450_s17, 1  ;;  %v578_v3 = vlaneseq (!%p517_p9)  ;;  %v4324_v4 = vmov (!%p517_p9), 0   ;;  %v4504_v12 = vld [vmem:[%s5110_s11] sm:$0xf] (!%p517_p9)  ;;  %vm628_vm0 = vcmask (!%p517_p9), 1041408  }
  0x16   : > { %520 = sbr.rel (%p517_p9) target bundleno = 5834 (0x16ca), region = 92  ;;  %s5136_s27 = sld [smem:[#allocation12_spill]] (!%p517_p9)  ;;  %4177 = vset.pattern.permute.xlu1 (!%p517_p9), %v4324_v4  ;;  %4176 = vset.pattern.permute.xlu0 (!%p517_p9), %v4324_v4  ;;  %v4325_v24 = vmov (!%p517_p9), 0.0   ;;  %vm615_vm1 = vcmask (!%p517_p9), 408576   ;;  %vm766_vm6 = vcmask (!%p517_p9), 261120   ;;  %vm4326_vm7 = vmmov (!%p517_p9), 0  }
  0x17   : > { %v4491_v8 = vshrl.u32 (!%p517_p9), %v578_v3, 7  ;;  %s5137_s22 = sld [smem:[#allocation11_spill]] (!%p517_p9)  ;;  %s5138_s3 = sld [smem:[#allocation14_spill]] (!%p517_p9)  ;;  %v579_v26 = vand.u32 (!%p517_p9), 127, %v578_v3  ;;  %v4579_v50 = vld [vmem:[%s5103_s4] ss:$0 sm:$0xff] (!%p517_p9) }
  0x18   : > { %vm1176_vm8 = vcmask (!%p517_p9), 64512   ;;  %s4328_s24 = smov (!%p517_p9), 64   ;;  %vm1836_vm9 = vcmask (!%p517_p9), 523264   ;;  %vm3246_vm10 = vcmask (!%p517_p9), 1041409   ;;  %vm3249_vm11 = vcmask (!%p517_p9), 1042434   ;;  %s567_s2 = sand.u32 (!%p517_p9), 1, %s4314_s30  }
  0x19   : > { %v756_v9 = vsub.s32 (!%p517_p9), 2, %v4491_v8  ;;  %v760_v10 = vsub.s32 (!%p517_p9), 3, %v4491_v8  ;;  %vm3252_vm12 = vcmask (!%p517_p9), 1043459   ;;  %s3641_s29 = sshll.u32 (!%p517_p9), %s4450_s17, 4  ;;  %s568_s26 = scalar_lea.vmem (!%p517_p9), [#allocation3], %s567_s2  ;;  %vm3490_vm13 = vcmask (!%p517_p9), 24576  }
  0x1a   : > { %s3505_s28 = sshll.u32 (!%p517_p9), %s568_s26, 4  ;;  %s5059_s28 = int_to_ptr.vmem [resolvable:$true] %s3505_s28 }
  0x1b   : > { %v4510_v16 = vrot.slane (!%p517_p9), %v4504_v12, %v756_v9  ;;  %v4513_v17 = vrot.slane (!%p517_p9), %v4504_v12, %v760_v10 }
  0x1c   : > { %v604_v0 = vld [vmem:[%s5136_s27] sm:$0xff] (!%p517_p9)  ;;  %v605_v1 = vld [vmem:[%s5136_s27 + $0x8] sm:$0xff] (!%p517_p9)  ;;  %v606_v2 = vld [vmem:[%s5136_s27 + $0x10] sm:$0xff] (!%p517_p9) }
  0x1d   : > { %v4027_v5 = vpack.c.bf16 %v605_v1, %v604_v0  ;;  %v607_v6 = vld [vmem:[%s5136_s27 + $0x18] sm:$0xff]  ;;  %s570_s20 = scalar_select %p569_p10, %s4450_s17, 1  ;;  %v608_v11 = vld [vmem:[%s5136_s27 + $0x20] sm:$0xff]  ;;  %v609_v13 = vld [vmem:[%s5136_s27 + $0x28] sm:$0xff] }
  0x1e   : > { %v4031_v7 = vpack.c.bf16 %v607_v6, %v606_v2  ;;  %v4035_v18 = vpack.c.bf16 %v609_v13, %v608_v11  ;;  %v610_v21 = vld [vmem:[%s5136_s27 + $0x30] sm:$0x3]  ;;  %v762_v22 = vld [vmem:[%s5138_s3] sm:$0xff]  ;;  %v763_v23 = vld [vmem:[%s5138_s3 + $0x8] sm:$0xff]  ;;  %s4330_s17 = smov [#allocation3]  }
  0x1f   : > { %4028 = vmatprep.subr.bf16.mxu0 %v4027_v5  ;;  %s3644_s25 = sshll.u32 %s570_s20, 5  ;;  %v4525_v25 = vpack.c.bf16 %v763_v23, %v762_v22  ;;  %v764_v35 = vld [vmem:[%s5138_s3 + $0x10] sm:$0xff]  ;;  %v765_v36 = vld [vmem:[%s5138_s3 + $0x18] sm:$0xff]  ;;  %s4327_s20 = smov 96  }
  0x20   : > { %4030 = vmatpush3.bf16.msra.mxu0 %v4027_v5  ;;  %s573_s0 = scalar_lea.vmem %s5137_s22, %s3644_s25  ;;  %v4539_v37 = vpack.c.bf16 %v765_v36, %v764_v35  ;;  %s5139_s25 = sld [smem:[#allocation13_spill]] }
  0x21   : > { %4032 = vmatprep.subr.bf16.mxu0 %v4031_v7  ;;  %v576_v14 = vld [vmem:[%s573_s0 + $0x10] sm:$0xff]  ;;  %v574_v15 = vld [vmem:[%s573_s0] sm:$0xff]  ;;  %v577_v19 = vld [vmem:[%s573_s0 + $0x18] sm:$0xff]  ;;  %4040 = vmatprep.subr.bf16.mxu1 %v4525_v25  ;;  %s5057_s22 = scalar_lea.hbm %s5117_s18, %s3641_s29 }
  0x22   : > { %587 = vperm.xlu1 %4177, %v576_v14   ;;  %581 = vperm.xlu0 %4176, %v574_v15   ;;  %v575_v20 = vld [vmem:[%s573_s0 + $0x8] sm:$0xff]  ;;  %s3412_s0 = sld [smem:[#allocation2]] }
  0x23   : > { %4042 = vmatpush3.bf16.msra.mxu1 %v4525_v25 }
  0x24   : > { %4034 = vmatpush3.bf16.msra.mxu0 %v4031_v7  ;;  %4044 = vmatprep.subr.bf16.mxu1 %v4539_v37 }
  0x25   : > { %4036 = vmatprep.subr.bf16.mxu0 %v4035_v18 }
  0x26   : > { %590 = vperm.xlu1 %4177, %v577_v19   ;;  %584 = vperm.xlu0 %4176, %v575_v20   ;;  %v611_v38 = vld [vmem:[%s5139_s25] sm:$0xff]  ;;  %v612_v39 = vld [vmem:[%s5139_s25 + $0x8] sm:$0xff]  ;;  %v613_v44 = vld [vmem:[%s5139_s25 + $0x10] sm:$0xff] }
  0x27   : > { %4046 = vmatpush3.bf16.msra.mxu1 %v4539_v37  ;;  %v614_v45 = vld [vmem:[%s5139_s25 + $0x18] sm:$0xff] }
  0x28   : > { %4038 = vmatpush3.bf16.msra.mxu0 %v4035_v18  ;;  %3806 = vmatprep.subr.mxu1 %v4325_v24 }
  0x29   : > { %3784 = vmatprep.subr.msk.mxu0 %vm628_vm0, %v610_v21 }
  0x2c   : > { %3785 = vmatpush3.msk.msra.mxu0 %vm628_vm0, %v610_v21 }
  0x2d   : > { %3816 = vmatprep.subr.mxu0 %v4325_v24 }
  0xa1   : > { %v588_v27 = vpop.permute.xlu1 %587  ;;  %v582_v28 = vpop.permute.xlu0 %581 }
  0xa2   : > { %vm592_vm2 = vcmp.eq.s32.totalorder %v582_v28, %v579_v26  ;;  %vm594_vm3 = vcmp.eq.s32.totalorder %v588_v27, %v579_v26 }
  0xa3   : > { %v3566_v29 = vsel %vm592_vm2, 1.0, %v4325_v24  ;;  %v3568_v32 = vsel %vm594_vm3, 1.0, %v4325_v24 }
  0xa4   : > { %3786 = vmatprep.mubr.msk.f32.mxu0 %vm615_vm1, %v3566_v29 }
  0xa5   : > { %v591_v30 = vpop.permute.xlu1 %590  ;;  %v585_v31 = vpop.permute.xlu0 %584 }
  0xa6   : > { %vm593_vm4 = vcmp.eq.s32.totalorder %v585_v31, %v579_v26  ;;  %vm595_vm5 = vcmp.eq.s32.totalorder %v591_v30, %v579_v26 }
  0xa7   : > { %v3567_v33 = vsel %vm593_vm4, 1.0, %v4325_v24  ;;  %v3569_v34 = vsel %vm595_vm5, 1.0, %v4325_v24 }
  0xa8   : > { %3787 = vmatmul.mubr.msk.f32.vlgmr.msra.gmra.mrb[0].mxu0 %vm615_vm1, %v3567_v33 }
  0xa9   : > { %3789 = vmatprep.mubr.msk.f32.mxu0 %vm615_vm1, %v3568_v32 }
  0xac   : > { %3790 = vmatmul.mubr.msk.f32.gmra.mrb[2].mxu0 %vm615_vm1, %v3569_v34 }
  0xad   : > { %3818 = vmatprep.mubr.msk.f32.mxu0 %vm4326_vm7, %v4325_v24 }
 0x17b   : > { %v3788_v40 = vpop.f32.mrb[0].mxu0 }
 0x17c   : > { %v698_v41 = vpop.f32.mrb[1].mxu0  ;;  %v4552_v43 = vadd.f32 %v3788_v40, %v612_v39 }
 0x17d   : > { %v4550_v42 = vadd.f32 %v698_v41, %v611_v38 }
 0x17f   : > { %v3791_v46 = vpop.f32.mrb[2].mxu0  ;;  %3800 = vmatprep.mubr.msk.f32.mxu1 %vm766_vm6, %v4550_v42 }
 0x180   : > { %v708_v47 = vpop.f32.mrb[3].mxu0  ;;  %3801 = vmatmul.mubr.msk.f32.vlgmr.msra.gmra.mrb[0].mxu1 %vm766_vm6, %v4552_v43  ;;  %v4566_v49 = vadd.f32 %v3791_v46, %v614_v45 }
 0x181   : > { %v4564_v48 = vadd.f32 %v708_v47, %v613_v44 }
 0x183   : > { %3803 = vmatprep.mubr.msk.f32.mxu1 %vm766_vm6, %v4564_v48 }
 0x184   : > { %3804 = vmatmul.mubr.msk.f32.gmra.mrb[2].mxu1 %vm766_vm6, %v4566_v49 }
 0x185   : > { %3808 = vmatprep.mubr.msk.f32.mxu1 %vm4326_vm7, %v4325_v24 }
 0x253   : > { %v3802_v51 = vpop.f32.mrb[0].mxu1 }
 0x254   : > { %v4582_v52 = vadd.f32 %v3802_v51, %v4579_v50  ;;  %v845_v53 = vpop.f32.mrb[1].mxu1 }
 0x255   : > { %v846_v54 = vadd.f32 %v4579_v50, %v845_v53  ;;  %v1525_v53 = vld [vmem:[%s5104_s5] sm:$0xff] }
 0x256   : > { %942 = vrot.lane.b32.xlu1 %v4582_v52, %s4327_s20 }
 0x257   : > { %v3805_v55 = vpop.f32.mrb[2].mxu1  ;;  %865 = vrot.lane.b32.xlu0 %v846_v54, %s4327_s20 }
 0x258   : > { %v4589_v56 = vadd.f32 %v3805_v55, %v4579_v50  ;;  %v855_v57 = vpop.f32.mrb[3].mxu1 }
 0x259   : > { %v4592_v58 = vadd.f32 %v4579_v50, %v855_v57 }
 0x25a   : > { %1096 = vrot.lane.b32.xlu1 %v4589_v56, %s4327_s20 }
 0x25b   : > { %1019 = vrot.lane.b32.xlu0 %v4592_v58, %s4327_s20 }
 0x2c8   : > { %v943_v60 = vpop.permute.xlu1 %942 }
 0x2c9   : > { %v866_v59 = vpop.permute.xlu0 %865 }
 0x2ca   : > { %3807 = vmatpush3.xpose.msk.msra.mxu1 %vm766_vm6, %v866_v59 }
 0x2cb   : > { %3811 = vmatprep.subr.mxu1 %v4325_v24 }
 0x2cc   : > { %v1097_v62 = vpop.permute.xlu1 %1096 }
 0x2cd   : > { %3809 = vmatmul.mubr.msk.f32.vlgmr.msra.gmra.mrb[4].mxu1 %vm766_vm6, %v846_v54  ;;  %v1020_v61 = vpop.permute.xlu0 %1019 }
 0x2ce   : > { %3812 = vmatpush3.xpose.msk.msra.mxu1 %vm766_vm6, %v943_v60  ;;  %3817 = vmatpush3.xpose.msk.msra.mxu0 %vm766_vm6, %v1020_v61 }
 0x2cf   : > { %3813 = vmatprep.mubr.msk.f32.mxu1 %vm4326_vm7, %v4325_v24  ;;  %3821 = vmatprep.subr.mxu1 %v4325_v24 }
 0x2d0   : > { %3826 = vmatprep.subr.mxu0 %v4325_v24 }
 0x2d1   : > { %3814 = vmatmul.mubr.msk.f32.vlgmr.msra.gmra.mrb[6].mxu1 %vm766_vm6, %v4582_v52  ;;  %3819 = vmatmul.mubr.msk.f32.vlgmr.msra.gmra.mrb[4].mxu0 %vm766_vm6, %v4592_v58 }
 0x2d2   : > { %3822 = vmatpush3.xpose.msk.msra.mxu1 %vm766_vm6, %v1097_v62  ;;  %3823 = vmatprep.mubr.msk.f32.mxu1 %vm4326_vm7, %v4325_v24 }
 0x2d3   : > { %3831 = vmatprep.subr.mxu1 %v4325_v24  ;;  %3828 = vmatprep.mubr.msk.f32.mxu0 %vm4326_vm7, %v4325_v24 }
 0x2d5   : > { %3824 = vmatmul.mubr.msk.f32.vlgmr.msra.gmra.mrb[8].mxu1 %vm766_vm6, %v4589_v56 }
 0x2d6   : > { %3833 = vmatprep.mubr.msk.f32.mxu1 %vm4326_vm7, %v4325_v24 }
 0x3a0   : > { %v937_v63 = vpop.f32.mrb[4].mxu1 }
 0x3a1   : > { %v1172_v0 = vmul.f32 0.17677669, %v937_v63  ;;  %v3810_v1 = vpop.f32.mrb[5].mxu1 }
 0x3a3   : > { %v1177_v2 = vsel %vm1176_vm8, %v1172_v0, -inf }
 0x3a4   : > { %1178 = vmax.xlane.f32.xlu0 %v1177_v2  ;;  %v1014_v3 = vpop.f32.mrb[6].mxu1  ;;  %v1091_v4 = vpop.f32.mrb[4].mxu0  ;;  %v1527_v2 = vld [vmem:[%s5104_s5 + $0x10] sm:$0xff] }
 0x3a5   : > { %v1173_v5 = vmul.f32 0.17677669, %v1014_v3  ;;  %v1174_v6 = vmul.f32 0.17677669, %v1091_v4  ;;  %v3815_v7 = vpop.f32.mrb[7].mxu1  ;;  %v3820_v9 = vpop.f32.mrb[5].mxu0 }
 0x3a6   : > { %v1528_v3 = vld [vmem:[%s5104_s5 + $0x18] sm:$0xff] }
 0x3a7   : > { %v1180_v10 = vsel %vm1176_vm8, %v1173_v5, -inf  ;;  %v1183_v11 = vsel %vm1176_vm8, %v1174_v6, -inf  ;;  %v4662_v4 = vpack.c.bf16 %v1528_v3, %v1527_v2 }
 0x3a8   : > { %1181 = vmax.xlane.f32.xlu1 %v1180_v10  ;;  %v1168_v13 = vpop.f32.mrb[8].mxu1  ;;  %1184 = vmax.xlane.f32.xlu0 %v1183_v11 }
 0x3a9   : > { %v1175_v14 = vmul.f32 0.17677669, %v1168_v13  ;;  %v3825_v15 = vpop.f32.mrb[9].mxu1 }
 0x3aa   : > { %v4673_v15 = vld [vmem:[%s5105_s6] ss:$0 sm:$0xff] }
 0x3ab   : > { %v1186_v18 = vsel %vm1176_vm8, %v1175_v14, -inf }
 0x3ac   : > { %1187 = vmax.xlane.f32.xlu0 %v1186_v18 }
 0x3b9   : > { %1221 = vrot.lane.b32.xlu1 %v846_v54, %s4328_s24  ;;  %v1526_v54 = vld [vmem:[%s5104_s5 + $0x8] sm:$0xff] }
 0x431   : > { %v1179_v19 = vpop.xlane.xlu0 %1178 }
 0x432   : > { %v1189_v20 = vsub.f32 %v1172_v0, %v1179_v19 }
 0x434   : > { %v1193_v21 = vmul.f32 1.442695, %v1189_v20 }
 0x435   : > { %v1182_v22 = vpop.xlane.xlu1 %1181  ;;  %v1185_v23 = vpop.xlane.xlu0 %1184 }
 0x436   : > { %4178 = vpow2.f32 %v1193_v21  ;;  %v1190_v26 = vsub.f32 %v1173_v5, %v1182_v22  ;;  %v1191_v27 = vsub.f32 %v1174_v6, %v1185_v23 }
 0x438   : > { %v1195_v28 = vmul.f32 1.442695, %v1190_v26  ;;  %v1197_v29 = vmul.f32 1.442695, %v1191_v27 }
 0x439   : > { %v1222_v30 = vpop.permute.xlu1 %1221  ;;  %v1188_v31 = vpop.xlane.xlu0 %1187 }
 0x43a   : > { %4180 = vpow2.f32 %v1195_v28  ;;  %v1192_v32 = vsub.f32 %v1175_v14, %v1188_v31  ;;  %3827 = vmatpush3.msra.mxu0 %v1222_v30 }
 0x43b   : > { %4182 = vpow2.f32 %v1197_v29  ;;  %3836 = vmatprep.subr.mxu0 %v4325_v24 }
 0x43c   : > { %v1199_v33 = vmul.f32 1.442695, %v1192_v32 }
 0x43e   : > { %4184 = vpow2.f32 %v1199_v33 }
 0x440   : > { %v4179_v34 = vpop.eup %4178 }
 0x441   : > { %v1201_v35 = vsel %vm1176_vm8, %v4179_v34, 0.0 }
 0x442   : > { %1202 = vadd.xlane.f32.xlu1 %v1201_v35 }
 0x444   : > { %v4181_v36 = vpop.eup %4180 }
 0x445   : > { %v4183_v38 = vpop.eup %4182  ;;  %v1204_v39 = vsel %vm1176_vm8, %v4181_v36, 0.0 }
 0x446   : > { %1205 = vadd.xlane.f32.xlu0 %v1204_v39  ;;  %v1207_v40 = vsel %vm1176_vm8, %v4183_v38, 0.0 }
 0x447   : > { %1208 = vadd.xlane.f32.xlu1 %v1207_v40 }
 0x448   : > { %v4185_v41 = vpop.eup %4184 }
 0x449   : > { %v1210_v44 = vsel %vm1176_vm8, %v4185_v41, 0.0 }
 0x44a   : > { %1211 = vadd.xlane.f32.xlu0 %v1210_v44 }
 0x458   : > { %1373 = vrot.lane.b32.xlu1 %v4592_v58, %s4328_s24  ;;  %v4643_v58 = vpack.c.bf16 %v1526_v54, %v1525_v53 }
 0x45c   : > { %1449 = vrot.lane.b32.xlu1 %v4589_v56, %s4328_s24 }
 0x460   : > { %1297 = vrot.lane.b32.xlu0 %v4582_v52, %s4328_s24 }
 0x4cf   : > { %v1203_v45 = vpop.xlane.xlu1 %1202 }
 0x4d0   : > { %4186 = vrcp.f32 %v1203_v45 }
 0x4d3   : > { %v1206_v46 = vpop.xlane.xlu0 %1205 }
 0x4d4   : > { %v1209_v47 = vpop.xlane.xlu1 %1208  ;;  %4188 = vrcp.f32 %v1206_v46 }
 0x4d5   : > { %4190 = vrcp.f32 %v1209_v47 }
 0x4d7   : > { %v1212_v51 = vpop.xlane.xlu0 %1211 }
 0x4d8   : > { %4192 = vrcp.f32 %v1212_v51  ;;  %v1374_v57 = vpop.permute.xlu1 %1373 }
 0x4da   : > { %v4187_v55 = vpop.eup %4186 }
 0x4db   : > { %v1217_v56 = vmul.f32 %v4187_v55, %v4179_v34  ;;  %v1298_v52 = vpop.permute.xlu0 %1297 }
 0x4dc   : > { %3832 = vmatpush3.msra.mxu1 %v1298_v52  ;;  %v1450_v63 = vpop.permute.xlu1 %1449 }
 0x4dd   : > { %3829 = vmatmul.mubr.msk.f32.vlgmr.msra.gmra.mrb[6].mxu0 %vm1176_vm8, %v1217_v56  ;;  %3841 = vmatprep.subr.mxu1 %v4325_v24 }
 0x4de   : > { %v4189_v59 = vpop.eup %4188  ;;  %3837 = vmatpush3.msra.mxu0 %v1374_v57  ;;  %3838 = vmatprep.mubr.msk.f32.mxu0 %vm4326_vm7, %v4325_v24 }
 0x4df   : > { %v4191_v60 = vpop.eup %4190  ;;  %v1218_v61 = vmul.f32 %v4189_v59, %v4181_v36  ;;  %4048 = vmatprep.subr.bf16.mxu0 %v4643_v58  ;;  %v1691_v59 = vld [vmem:[%s5106_s7] sm:$0xff] }
 0x4e0   : > { %v1219_v62 = vmul.f32 %v4191_v60, %v4183_v38  ;;  %v1692_v60 = vld [vmem:[%s5106_s7 + $0x8] sm:$0xff] }
 0x4e1   : > { %3834 = vmatmul.mubr.msk.f32.vlgmr.msra.gmra.mrb[10].mxu1 %vm1176_vm8, %v1218_v61  ;;  %v4697_v61 = vpack.c.bf16 %v1692_v60, %v1691_v59 }
 0x4e2   : > { %v4193_v0 = vpop.eup %4192  ;;  %3839 = vmatmul.mubr.msk.f32.vlgmr.msra.gmra.mrb[8].mxu0 %vm1176_vm8, %v1219_v62  ;;  %3842 = vmatpush3.msra.mxu1 %v1450_v63  ;;  %v1693_v62 = vld [vmem:[%s5106_s7 + $0x10] sm:$0xff]  ;;  %v1694_v63 = vld [vmem:[%s5106_s7 + $0x18] sm:$0xff] }
 0x4e3   : > { %v1220_v1 = vmul.f32 %v4193_v0, %v4185_v41  ;;  %3843 = vmatprep.mubr.msk.f32.mxu1 %vm4326_vm7, %v4325_v24  ;;  %4050 = vmatpush3.bf16.msra.mxu0 %v4643_v58  ;;  %v4706_v0 = vpack.c.bf16 %v1694_v63, %v1693_v62 }
 0x4e4   : > { %4052 = vmatprep.subr.bf16.mxu0 %v4662_v4  ;;  %4056 = vmatprep.subr.bf16.mxu1 %v4697_v61 }
 0x4e5   : > { %3844 = vmatmul.mubr.msk.f32.vlgmr.msra.gmra.mrb[12].mxu1 %vm1176_vm8, %v1220_v1 }
 0x4e6   : > { %4058 = vmatpush3.bf16.msra.mxu1 %v4697_v61 }
 0x4e7   : > { %4054 = vmatpush3.bf16.msra.mxu0 %v4662_v4  ;;  %4060 = vmatprep.subr.bf16.mxu1 %v4706_v0 }
 0x4ea   : > { %4062 = vmatpush3.bf16.msra.mxu1 %v4706_v0 }
 0x4eb   : > { %4080 = vmatprep.subr.bf16.mxu1 %v4525_v25 }
 0x5b0   : > { %v1293_v5 = vpop.f32.mrb[6].mxu0 }
 0x5b1   : > { %v3830_v6 = vpop.f32.mrb[7].mxu0  ;;  %3854 = vmatprep.mubr.msk.f32.mxu0 %vm766_vm6, %v1293_v5 }
 0x5b4   : > { %v1369_v7 = vpop.f32.mrb[10].mxu1 }
 0x5b5   : > { %v1445_v9 = vpop.f32.mrb[8].mxu0  ;;  %v3835_v10 = vpop.f32.mrb[11].mxu1  ;;  %3855 = vmatmul.mubr.msk.f32.vlgmr.msra.gmra.mrb[10].mxu0 %vm766_vm6, %v1369_v7 }
 0x5b6   : > { %v3840_v11 = vpop.f32.mrb[9].mxu0  ;;  %3857 = vmatprep.mubr.msk.f32.mxu0 %vm766_vm6, %v1445_v9 }
 0x5b8   : > { %v1521_v13 = vpop.f32.mrb[12].mxu1 }
 0x5b9   : > { %v3845_v14 = vpop.f32.mrb[13].mxu1  ;;  %3858 = vmatmul.mubr.msk.f32.gmra.mrb[12].mxu0 %vm766_vm6, %v1521_v13 }
 0x5ba   : > { %v748_v14 = vsub.s32 0, %v4491_v8 }
 0x688   : > { %v3856_v18 = vpop.f32.mrb[10].mxu0 }
 0x689   : > { %v1613_v19 = vadd.f32 %v3856_v18, %v4673_v15  ;;  %v1607_v20 = vpop.f32.mrb[11].mxu0 }
 0x68a   : > { %v1608_v21 = vadd.f32 %v4673_v15, %v1607_v20  ;;  %v752_v20 = vsub.s32 1, %v4491_v8 }
 0x68b   : > { %v1627_v22 = vadd.f32 %v1613_v19, %v4552_v43 }
 0x68c   : > { %v3859_v23 = vpop.f32.mrb[12].mxu0  ;;  %v1626_v26 = vadd.f32 %v1608_v21, %v4550_v42  ;;  %v4715_v21 = vrot.slane %v4504_v12, %v748_v14 }
 0x68d   : > { %v1617_v27 = vpop.f32.mrb[13].mxu0  ;;  %v1633_v28 = vsel %vm766_vm6, %v1627_v22, 0.0  ;;  %v1623_v29 = vadd.f32 %v3859_v23, %v4673_v15 }
 0x68e   : > { %v1618_v30 = vadd.f32 %v4673_v15, %v1617_v27  ;;  %1634 = vadd.xlane.f32.xlu1 %v1633_v28  ;;  %v1630_v31 = vsel %vm766_vm6, %v1626_v26, 0.0  ;;  %v4718_v27 = vrot.slane %v4504_v12, %v752_v20 }
 0x68f   : > { %1631 = vadd.xlane.f32.xlu0 %v1630_v31  ;;  %v1629_v43 = vadd.f32 %v1623_v29, %v4566_v49 }
 0x690   : > { %v1628_v32 = vadd.f32 %v1618_v30, %v4564_v48 }
 0x691   : > { %v1639_v42 = vsel %vm766_vm6, %v1629_v43, 0.0 }
 0x692   : > { %v1636_v33 = vsel %vm766_vm6, %v1628_v32, 0.0 }
 0x693   : > { %1637 = vadd.xlane.f32.xlu0 %v1636_v33 }
 0x697   : > { %1640 = vadd.xlane.f32.xlu0 %v1639_v42 }
 0x71b   : > { %v1635_v34 = vpop.xlane.xlu1 %1634 }
 0x71c   : > { %v1644_v35 = vmul.f32 0.03125, %v1635_v34  ;;  %v1632_v36 = vpop.xlane.xlu0 %1631 }
 0x71d   : > { %v1643_v38 = vmul.f32 0.03125, %v1632_v36 }
 0x71e   : > { %v1648_v39 = vsub.f32 %v1627_v22, %v1644_v35 }
 0x71f   : > { %v1647_v40 = vsub.f32 %v1626_v26, %v1643_v38  ;;  %v1829_v38 = vld [vmem:[%s5108_s9 + $0x8] sm:$0xff] }
 0x720   : > { %v1638_v41 = vpop.xlane.xlu0 %1637  ;;  %v1652_v44 = vmul.f32 %v1648_v39, %v1648_v39 }
 0x721   : > { %v1645_v45 = vmul.f32 0.03125, %v1638_v41  ;;  %v1651_v46 = vmul.f32 %v1647_v40, %v1647_v40 }
 0x722   : > { %v1658_v48 = vsel %vm766_vm6, %v1652_v44, 0.0  ;;  %v1832_v44 = vld [vmem:[%s5108_s9 + $0x20] sm:$0xff] }
 0x723   : > { %v1649_v47 = vsub.f32 %v1628_v32, %v1645_v45  ;;  %1659 = vadd.xlane.f32.xlu0 %v1658_v48  ;;  %v1655_v49 = vsel %vm766_vm6, %v1651_v46, 0.0  ;;  %v1833_v45 = vld [vmem:[%s5108_s9 + $0x28] sm:$0xff]  ;;  %v1834_v48 = vld [vmem:[%s5108_s9 + $0x30] sm:$0xff] }
 0x724   : > { %1656 = vadd.xlane.f32.xlu1 %v1655_v49  ;;  %v1641_v51 = vpop.xlane.xlu0 %1640  ;;  %v4774_v46 = vpack.c.bf16 %v1833_v45, %v1832_v44 }
 0x725   : > { %v1646_v53 = vmul.f32 0.03125, %v1641_v51  ;;  %v1653_v54 = vmul.f32 %v1649_v47, %v1649_v47  ;;  %v4792_v51 = vld [vmem:[%s5107_s8] ss:$0 sm:$0xff] }
 0x727   : > { %v1650_v55 = vsub.f32 %v1629_v43, %v1646_v53  ;;  %v1661_v56 = vsel %vm766_vm6, %v1653_v54, 0.0 }
 0x728   : > { %1662 = vadd.xlane.f32.xlu1 %v1661_v56 }
 0x729   : > { %v1654_v57 = vmul.f32 %v1650_v55, %v1650_v55 }
 0x72b   : > { %v1664_v52 = vsel %vm766_vm6, %v1654_v57, 0.0 }
 0x72c   : > { %1665 = vadd.xlane.f32.xlu0 %v1664_v52 }
 0x7b0   : > { %v1660_v1 = vpop.xlane.xlu0 %1659 }
 0x7b1   : > { %v1668_v2 = vmul.f32 0.03125, %v1660_v1  ;;  %v1657_v3 = vpop.xlane.xlu1 %1656 }
 0x7b2   : > { %v1667_v5 = vmul.f32 0.03125, %v1657_v3 }
 0x7b3   : > { %v1672_v6 = vadd.f32 1e-12, %v1668_v2 }
 0x7b4   : > { %v1671_v7 = vadd.f32 1e-12, %v1667_v5 }
 0x7b5   : > { %4194 = vrsqrt.f32 %v1672_v6  ;;  %v1663_v9 = vpop.xlane.xlu1 %1662 }
 0x7b6   : > { %4196 = vrsqrt.f32 %v1671_v7  ;;  %v1669_v10 = vmul.f32 0.03125, %v1663_v9 }
 0x7b8   : > { %v1673_v11 = vadd.f32 1e-12, %v1669_v10 }
 0x7b9   : > { %v1666_v13 = vpop.xlane.xlu0 %1665 }
 0x7ba   : > { %4198 = vrsqrt.f32 %v1673_v11  ;;  %v1670_v18 = vmul.f32 0.03125, %v1666_v13 }
 0x7bc   : > { %v1674_v19 = vadd.f32 1e-12, %v1670_v18 }
 0x7be   : > { %4200 = vrsqrt.f32 %v1674_v19 }
 0x7bf   : > { %v4195_v22 = vpop.eup %4194 }
 0x7c0   : > { %v4197_v23 = vpop.eup %4196  ;;  %v1680_v26 = vmul.f32 %v4195_v22, %v1648_v39 }
 0x7c1   : > { %v1679_v28 = vmul.f32 %v4197_v23, %v1647_v40  ;;  %v1831_v40 = vld [vmem:[%s5108_s9 + $0x18] sm:$0xff] }
 0x7c2   : > { %v1684_v29 = vmul.f32 %v1680_v26, %v4715_v21 }
 0x7c3   : > { %v1683_v30 = vmul.f32 %v1679_v28, %v4715_v21 }
 0x7c4   : > { %v4199_v31 = vpop.eup %4198  ;;  %v4726_v33 = vadd.f32 %v1684_v29, %v4718_v27 }
 0x7c5   : > { %v4723_v32 = vadd.f32 %v1683_v30, %v4718_v27  ;;  %v1681_v8 = vmul.f32 %v4199_v31, %v1649_v47  ;;  %v1835_v47 = vld [vmem:[%s5108_s9 + $0x38] sm:$0xff] }
 0x7c6   : > { %v4784_v49 = vpack.c.bf16 %v1835_v47, %v1834_v48 }
 0x7c7   : > { %3868 = vmatprep.mubr.msk.f32.mxu1 %vm766_vm6, %v4723_v32  ;;  %v1685_v43 = vmul.f32 %v1681_v8, %v4715_v21 }
 0x7c8   : > { %v4201_v12 = vpop.eup %4200  ;;  %3869 = vmatmul.mubr.msk.f32.vlgmr.msra.gmra.mrb[14].mxu1 %vm766_vm6, %v4726_v33 }
 0x7c9   : > { %v4734_v42 = vadd.f32 %v1685_v43, %v4718_v27  ;;  %v1682_v34 = vmul.f32 %v4201_v12, %v1650_v55  ;;  %4082 = vmatpush3.bf16.msra.mxu1 %v4525_v25  ;;  %v1828_v25 = vld [vmem:[%s5108_s9] sm:$0xff] }
 0x7ca   : > { %4084 = vmatprep.subr.bf16.mxu1 %v4539_v37  ;;  %v4754_v39 = vpack.c.bf16 %v1829_v38, %v1828_v25 }
 0x7cb   : > { %3871 = vmatprep.mubr.msk.f32.mxu1 %vm766_vm6, %v4734_v42  ;;  %v1686_v35 = vmul.f32 %v1682_v34, %v4715_v21 }
 0x7cc   : > { %4064 = vmatprep.subr.bf16.mxu0 %v4754_v39 }
 0x7cd   : > { %v4742_v36 = vadd.f32 %v1686_v35, %v4718_v27  ;;  %4086 = vmatpush3.bf16.msra.mxu1 %v4539_v37  ;;  %4066 = vmatpush3.bf16.msra.mxu0 %v4754_v39  ;;  %v1830_v37 = vld [vmem:[%s5108_s9 + $0x10] sm:$0xff] }
 0x7ce   : > { %3910 = vmatprep.subr.mxu1 %v4325_v24  ;;  %v4764_v41 = vpack.c.bf16 %v1831_v40, %v1830_v37 }
 0x7cf   : > { %3872 = vmatmul.mubr.msk.f32.gmra.mrb[16].mxu1 %vm766_vm6, %v4742_v36 }
 0x7d0   : > { %4068 = vmatprep.subr.bf16.mxu0 %v4764_v41 }
 0x7d1   : > { %4070 = vmatpush3.bf16.msra.mxu0 %v4764_v41 }
 0x7d2   : > { %4072 = vmatprep.subr.bf16.mxu0 %v4774_v46 }
 0x7d5   : > { %4074 = vmatpush3.bf16.msra.mxu0 %v4774_v46 }
 0x7d6   : > { %4076 = vmatprep.subr.bf16.mxu0 %v4784_v49 }
 0x7d9   : > { %4078 = vmatpush3.bf16.msra.mxu0 %v4784_v49 }
 0x7da   : > { %3920 = vmatprep.subr.mxu0 %v4325_v24 }
 0x89b   : > { %v3870_v53 = vpop.f32.mrb[14].mxu1 }
 0x89c   : > { %v1779_v54 = vadd.f32 %v3870_v53, %v4792_v51  ;;  %v1773_v55 = vpop.f32.mrb[15].mxu1  ;;  %v4807_v53 = vld [vmem:[%s5109_s10] ss:$0 sm:$0xff] }
 0x89d   : > { %v1774_v56 = vadd.f32 %v4792_v51, %v1773_v55 }
 0x89e   : > { %v1793_v57 = vmul.f32 %v1779_v54, %v1779_v54 }
 0x89f   : > { %v1792_v52 = vmul.f32 %v1774_v56, %v1774_v56 }
 0x8a0   : > { %v1797_v59 = vmul.f32 %v1793_v57, %v1779_v54 }
 0x8a1   : > { %v1796_v60 = vmul.f32 %v1792_v52, %v1774_v56 }
 0x8a2   : > { %v1801_v62 = vmul.f32 0.044715, %v1797_v59  ;;  %v3873_v63 = vpop.f32.mrb[16].mxu1 }
 0x8a3   : > { %v1800_v1 = vmul.f32 0.044715, %v1796_v60  ;;  %v1789_v2 = vadd.f32 %v3873_v63, %v4792_v51  ;;  %v1783_v3 = vpop.f32.mrb[17].mxu1 }
 0x8a4   : > { %v1805_v5 = vadd.f32 %v1801_v62, %v1779_v54  ;;  %v1784_v6 = vadd.f32 %v4792_v51, %v1783_v3 }
 0x8a5   : > { %v1804_v7 = vadd.f32 %v1800_v1, %v1774_v56  ;;  %v1795_v9 = vmul.f32 %v1789_v2, %v1789_v2 }
 0x8a6   : > { %v1809_v10 = vmul.f32 0.7978846, %v1805_v5  ;;  %v1794_v11 = vmul.f32 %v1784_v6, %v1784_v6 }
 0x8a7   : > { %v1808_v13 = vmul.f32 0.7978846, %v1804_v7  ;;  %v1799_v14 = vmul.f32 %v1795_v9, %v1789_v2 }
 0x8a8   : > { %4202 = vtanh.f32 %v1809_v10  ;;  %v1798_v18 = vmul.f32 %v1794_v11, %v1784_v6 }
 0x8a9   : > { %4204 = vtanh.f32 %v1808_v13  ;;  %v1803_v19 = vmul.f32 0.044715, %v1799_v14 }
 0x8aa   : > { %v1802_v20 = vmul.f32 0.044715, %v1798_v18 }
 0x8ab   : > { %v1807_v22 = vadd.f32 %v1803_v19, %v1789_v2 }
 0x8ac   : > { %v1806_v23 = vadd.f32 %v1802_v20, %v1784_v6 }
 0x8ad   : > { %v1811_v26 = vmul.f32 0.7978846, %v1807_v22 }
 0x8ae   : > { %v1810_v28 = vmul.f32 0.7978846, %v1806_v23 }
 0x8af   : > { %4206 = vtanh.f32 %v1811_v26 }
 0x8b0   : > { %4208 = vtanh.f32 %v1810_v28 }
 0x8b2   : > { %v4203_v29 = vpop.eup %4202 }
 0x8b3   : > { %v4205_v30 = vpop.eup %4204  ;;  %v1817_v31 = vadd.f32 1.0, %v4203_v29 }
 0x8b4   : > { %v1816_v8 = vadd.f32 1.0, %v4205_v30 }
 0x8b5   : > { %v1821_v43 = vmul.f32 0.5, %v1817_v31 }
 0x8b6   : > { %v1820_v12 = vmul.f32 0.5, %v1816_v8 }
 0x8b7   : > { %v1825_v25 = vmul.f32 %v1821_v43, %v1779_v54 }
 0x8b8   : > { %v1824_v34 = vmul.f32 %v1820_v12, %v1774_v56 }
 0x8b9   : > { %v4207_v35 = vpop.eup %4206 }
 0x8ba   : > { %v4209_v38 = vpop.eup %4208  ;;  %3890 = vmatprep.mubr.msk.f32.mxu0 %vm1836_vm9, %v1824_v34  ;;  %v1819_v37 = vadd.f32 1.0, %v4207_v35 }
 0x8bb   : > { %3891 = vmatmul.mubr.msk.f32.vlgmr.msra.gmra.mrb[14].mxu0 %vm1836_vm9, %v1825_v25  ;;  %v1818_v40 = vadd.f32 1.0, %v4209_v38 }
 0x8bc   : > { %v1823_v44 = vmul.f32 0.5, %v1819_v37 }
 0x8bd   : > { %v1822_v45 = vmul.f32 0.5, %v1818_v40 }
 0x8be   : > { %v1827_v47 = vmul.f32 %v1823_v44, %v1789_v2 }
 0x8bf   : > { %v1826_v48 = vmul.f32 %v1822_v45, %v1784_v6 }
 0x8c1   : > { %3893 = vmatprep.mubr.msk.f32.mxu0 %vm1836_vm9, %v1826_v48 }
 0x8c2   : > { %3894 = vmatmul.mubr.msk.f32.gmra.mrb[16].mxu0 %vm1836_vm9, %v1827_v47 }
 0x8c3   : > { %3922 = vmatprep.mubr.msk.f32.mxu0 %vm4326_vm7, %v4325_v24 }
 0x98e   : > { %v3892_v54 = vpop.f32.mrb[14].mxu0 }
 0x98f   : > { %v1921_v55 = vadd.f32 %v3892_v54, %v4807_v53  ;;  %v1915_v56 = vpop.f32.mrb[15].mxu0 }
 0x990   : > { %v1916_v57 = vadd.f32 %v4807_v53, %v1915_v56 }
 0x991   : > { %v1935_v52 = vadd.f32 %v1921_v55, %v4726_v33 }
 0x992   : > { %v1934_v59 = vadd.f32 %v1916_v57, %v4723_v32 }
 0x993   : > { %v1941_v60 = vsel %vm766_vm6, %v1935_v52, 0.0 }
 0x994   : > { %1942 = vadd.xlane.f32.xlu0 %v1941_v60  ;;  %v1938_v62 = vsel %vm766_vm6, %v1934_v59, 0.0 }
 0x995   : > { %v3895_v63 = vpop.f32.mrb[16].mxu0  ;;  %1939 = vadd.xlane.f32.xlu1 %v1938_v62 }
 0x996   : > { %v1931_v1 = vadd.f32 %v3895_v63, %v4807_v53  ;;  %v1925_v2 = vpop.f32.mrb[17].mxu0 }
 0x997   : > { %v1926_v3 = vadd.f32 %v4807_v53, %v1925_v2 }
 0x998   : > { %v1937_v5 = vadd.f32 %v1931_v1, %v4742_v36 }
 0x999   : > { %v1936_v6 = vadd.f32 %v1926_v3, %v4734_v42 }
 0x99a   : > { %v1947_v33 = vsel %vm766_vm6, %v1937_v5, 0.0 }
 0x99b   : > { %1948 = vadd.xlane.f32.xlu0 %v1947_v33  ;;  %v1944_v32 = vsel %vm766_vm6, %v1936_v6, 0.0 }
 0x99c   : > { %1945 = vadd.xlane.f32.xlu1 %v1944_v32 }
 0xa21   : > { %v1943_v7 = vpop.xlane.xlu0 %1942 }
 0xa22   : > { %v1951_v9 = vmul.f32 0.03125, %v1943_v7  ;;  %v1940_v10 = vpop.xlane.xlu1 %1939 }
 0xa23   : > { %v1950_v11 = vmul.f32 0.03125, %v1940_v10 }
 0xa24   : > { %v1955_v13 = vsub.f32 %v1935_v52, %v1951_v9 }
 0xa25   : > { %v1954_v14 = vsub.f32 %v1934_v59, %v1950_v11 }
 0xa26   : > { %v1959_v18 = vmul.f32 %v1955_v13, %v1955_v13 }
 0xa27   : > { %v1958_v19 = vmul.f32 %v1954_v14, %v1954_v14 }
 0xa28   : > { %v1949_v20 = vpop.xlane.xlu0 %1948  ;;  %v1965_v22 = vsel %vm766_vm6, %v1959_v18, 0.0 }
 0xa29   : > { %v1953_v36 = vmul.f32 0.03125, %v1949_v20  ;;  %1966 = vadd.xlane.f32.xlu0 %v1965_v22  ;;  %v1946_v42 = vpop.xlane.xlu1 %1945  ;;  %v1962_v23 = vsel %vm766_vm6, %v1958_v19, 0.0 }
 0xa2a   : > { %v1952_v26 = vmul.f32 0.03125, %v1946_v42  ;;  %1963 = vadd.xlane.f32.xlu1 %v1962_v23 }
 0xa2b   : > { %v1957_v28 = vsub.f32 %v1937_v5, %v1953_v36 }
 0xa2c   : > { %v1956_v29 = vsub.f32 %v1936_v6, %v1952_v26 }
 0xa2d   : > { %v1961_v30 = vmul.f32 %v1957_v28, %v1957_v28 }
 0xa2e   : > { %v1960_v31 = vmul.f32 %v1956_v29, %v1956_v29 }
 0xa2f   : > { %v1971_v8 = vsel %vm766_vm6, %v1961_v30, 0.0 }
 0xa30   : > { %1972 = vadd.xlane.f32.xlu0 %v1971_v8  ;;  %v1968_v43 = vsel %vm766_vm6, %v1960_v31, 0.0 }
 0xa31   : > { %1969 = vadd.xlane.f32.xlu1 %v1968_v43 }
 0xab6   : > { %v1967_v12 = vpop.xlane.xlu0 %1966 }
 0xab7   : > { %v1975_v34 = vmul.f32 0.03125, %v1967_v12  ;;  %v1964_v35 = vpop.xlane.xlu1 %1963 }
 0xab8   : > { %v1974_v25 = vmul.f32 0.03125, %v1964_v35 }
 0xab9   : > { %v1979_v38 = vadd.f32 1e-12, %v1975_v34 }
 0xaba   : > { %v1978_v37 = vadd.f32 1e-12, %v1974_v25 }
 0xabb   : > { %4210 = vrsqrt.f32 %v1979_v38 }
 0xabc   : > { %4212 = vrsqrt.f32 %v1978_v37 }
 0xabd   : > { %v1973_v40 = vpop.xlane.xlu0 %1972 }
 0xabe   : > { %v1977_v44 = vmul.f32 0.03125, %v1973_v40  ;;  %v1970_v45 = vpop.xlane.xlu1 %1969 }
 0xabf   : > { %v1976_v48 = vmul.f32 0.03125, %v1970_v45 }
 0xac0   : > { %v1981_v47 = vadd.f32 1e-12, %v1977_v44 }
 0xac1   : > { %v1980_v54 = vadd.f32 1e-12, %v1976_v48 }
 0xac2   : > { %4214 = vrsqrt.f32 %v1981_v47 }
 0xac3   : > { %4216 = vrsqrt.f32 %v1980_v54 }
 0xac5   : > { %v4211_v55 = vpop.eup %4210 }
 0xac6   : > { %v4213_v56 = vpop.eup %4212  ;;  %v1987_v57 = vmul.f32 %v4211_v55, %v1955_v13 }
 0xac7   : > { %v1986_v52 = vmul.f32 %v4213_v56, %v1954_v14 }
 0xac8   : > { %v1991_v59 = vmul.f32 %v1987_v57, %v4510_v16 }
 0xac9   : > { %v1990_v60 = vmul.f32 %v1986_v52, %v4510_v16 }
 0xaca   : > { %v4831_v1 = vadd.f32 %v1991_v59, %v4513_v17 }
 0xacb   : > { %v4828_v62 = vadd.f32 %v1990_v60, %v4513_v17 }
 0xacc   : > { %v4215_v63 = vpop.eup %4214 }
 0xacd   : > { %v4217_v2 = vpop.eup %4216  ;;  %3904 = vmatprep.mubr.msk.f32.mxu1 %vm766_vm6, %v4828_v62  ;;  %v1989_v3 = vmul.f32 %v4215_v63, %v1957_v28 }
 0xace   : > { %3905 = vmatmul.mubr.msk.f32.vlgmr.msra.gmra.mrb[18].mxu1 %vm766_vm6, %v4831_v1  ;;  %v1988_v5 = vmul.f32 %v4217_v2, %v1956_v29 }
 0xacf   : > { %v1993_v6 = vmul.f32 %v1989_v3, %v4510_v16 }
 0xad0   : > { %v1992_v33 = vmul.f32 %v1988_v5, %v4510_v16 }
 0xad1   : > { %v4843_v7 = vadd.f32 %v1993_v6, %v4513_v17 }
 0xad2   : > { %v4840_v32 = vadd.f32 %v1992_v33, %v4513_v17 }
 0xad4   : > { %3907 = vmatprep.mubr.msk.f32.mxu1 %vm766_vm6, %v4840_v32 }
 0xad5   : > { %3908 = vmatmul.mubr.msk.f32.gmra.mrb[20].mxu1 %vm766_vm6, %v4843_v7 }
 0xad6   : > { %3912 = vmatprep.mubr.msk.f32.mxu1 %vm4326_vm7, %v4325_v24 }
 0xba1   : > { %v3906_v9 = vpop.f32.mrb[18].mxu1 }
 0xba2   : > { %v4852_v10 = vadd.f32 %v3906_v9, %v4579_v50  ;;  %v2080_v11 = vpop.f32.mrb[19].mxu1 }
 0xba3   : > { %v2081_v13 = vadd.f32 %v4579_v50, %v2080_v11 }
 0xba4   : > { %2177 = vrot.lane.b32.xlu0 %v4852_v10, %s4327_s20 }
 0xba5   : > { %2100 = vrot.lane.b32.xlu1 %v2081_v13, %s4327_s20 }
 0xba8   : > { %v3909_v14 = vpop.f32.mrb[20].mxu1 }
 0xba9   : > { %v2090_v18 = vpop.f32.mrb[21].mxu1  ;;  %v4864_v20 = vadd.f32 %v3909_v14, %v4579_v50 }
 0xbaa   : > { %v4859_v19 = vadd.f32 %v4579_v50, %v2090_v18 }
 0xbac   : > { %2254 = vrot.lane.b32.xlu1 %v4859_v19, %s4327_s20 }
 0xbb0   : > { %2331 = vrot.lane.b32.xlu1 %v4864_v20, %s4327_s20  ;;  %s3493_s20 = scalar_lea.sflag [#allocation4], %s567_s2 }
 0xc16   : > { %v2178_v36 = vpop.permute.xlu0 %2177 }
 0xc17   : > { %v2101_v22 = vpop.permute.xlu1 %2100 }
 0xc18   : > { %3911 = vmatpush3.xpose.msk.msra.mxu1 %vm766_vm6, %v2101_v22 }
 0xc19   : > { %3915 = vmatprep.subr.mxu1 %v4325_v24 }
 0xc1b   : > { %3913 = vmatmul.mubr.msk.f32.vlgmr.msra.gmra.mrb[22].mxu1 %vm766_vm6, %v2081_v13 }
 0xc1c   : > { %3916 = vmatpush3.xpose.msk.msra.mxu1 %vm766_vm6, %v2178_v36  ;;  %3917 = vmatprep.mubr.msk.f32.mxu1 %vm4326_vm7, %v4325_v24 }
 0xc1d   : > { %3925 = vmatprep.subr.mxu1 %v4325_v24 }
 0xc1e   : > { %v2255_v50 = vpop.permute.xlu1 %2254 }
 0xc1f   : > { %3918 = vmatmul.mubr.msk.f32.vlgmr.msra.gmra.mrb[24].mxu1 %vm766_vm6, %v4852_v10  ;;  %3921 = vmatpush3.xpose.msk.msra.mxu0 %vm766_vm6, %v2255_v50 }
 0xc20   : > { %3927 = vmatprep.mubr.msk.f32.mxu1 %vm4326_vm7, %v4325_v24  ;;  %3930 = vmatprep.subr.mxu0 %v4325_v24 }
 0xc22   : > { %3923 = vmatmul.mubr.msk.f32.vlgmr.msra.gmra.mrb[18].mxu0 %vm766_vm6, %v4859_v19  ;;  %v2332_v42 = vpop.permute.xlu1 %2331 }
 0xc23   : > { %3926 = vmatpush3.xpose.msk.msra.mxu1 %vm766_vm6, %v2332_v42  ;;  %3932 = vmatprep.mubr.msk.f32.mxu0 %vm4326_vm7, %v4325_v24 }
 0xc24   : > { %3935 = vmatprep.subr.mxu1 %v4325_v24 }
 0xc26   : > { %3928 = vmatmul.mubr.msk.f32.vlgmr.msra.gmra.mrb[26].mxu1 %vm766_vm6, %v4864_v20 }
 0xc27   : > { %3937 = vmatprep.mubr.msk.f32.mxu1 %vm4326_vm7, %v4325_v24 }
 0xcee   : > { %v2172_v23 = vpop.f32.mrb[22].mxu1 }
 0xcef   : > { %v2407_v26 = vmul.f32 0.17677669, %v2172_v23  ;;  %v3914_v28 = vpop.f32.mrb[23].mxu1 }
 0xcf1   : > { %v2411_v29 = vsel %vm1176_vm8, %v2407_v26, -inf }
 0xcf2   : > { %2412 = vmax.xlane.f32.xlu0 %v2411_v29  ;;  %v2249_v30 = vpop.f32.mrb[24].mxu1 }
 0xcf3   : > { %v2408_v31 = vmul.f32 0.17677669, %v2249_v30  ;;  %v3919_v8 = vpop.f32.mrb[25].mxu1 }
 0xcf5   : > { %v2326_v43 = vpop.f32.mrb[18].mxu0  ;;  %v2414_v12 = vsel %vm1176_vm8, %v2408_v31, -inf }
 0xcf6   : > { %v2409_v34 = vmul.f32 0.17677669, %v2326_v43  ;;  %2415 = vmax.xlane.f32.xlu1 %v2414_v12  ;;  %v3924_v35 = vpop.f32.mrb[19].mxu0 }
 0xcf8   : > { %v2417_v25 = vsel %vm1176_vm8, %v2409_v34, -inf }
 0xcf9   : > { %2418 = vmax.xlane.f32.xlu0 %v2417_v25  ;;  %v2403_v38 = vpop.f32.mrb[26].mxu1 }
 0xcfa   : > { %v2410_v37 = vmul.f32 0.17677669, %v2403_v38  ;;  %v3929_v40 = vpop.f32.mrb[27].mxu1 }
 0xcfc   : > { %v2420_v44 = vsel %vm1176_vm8, %v2410_v37, -inf }
 0xcfd   : > { %2421 = vmax.xlane.f32.xlu0 %v2420_v44 }
 0xd07   : > { %2455 = vrot.lane.b32.xlu1 %v2081_v13, %s4328_s24 }
 0xd7f   : > { %v2413_v45 = vpop.xlane.xlu0 %2412 }
 0xd80   : > { %v2423_v48 = vsub.f32 %v2407_v26, %v2413_v45 }
 0xd82   : > { %v2427_v47 = vmul.f32 1.442695, %v2423_v48 }
 0xd83   : > { %v2416_v54 = vpop.xlane.xlu1 %2415 }
 0xd84   : > { %4218 = vpow2.f32 %v2427_v47  ;;  %v2424_v55 = vsub.f32 %v2408_v31, %v2416_v54 }
 0xd86   : > { %v2429_v56 = vmul.f32 1.442695, %v2424_v55  ;;  %v2419_v57 = vpop.xlane.xlu0 %2418 }
 0xd87   : > { %v2425_v52 = vsub.f32 %v2409_v34, %v2419_v57  ;;  %v2456_v59 = vpop.permute.xlu1 %2455 }
 0xd88   : > { %4220 = vpow2.f32 %v2429_v56  ;;  %3931 = vmatpush3.msra.mxu0 %v2456_v59 }
 0xd89   : > { %v2431_v60 = vmul.f32 1.442695, %v2425_v52  ;;  %3940 = vmatprep.subr.mxu0 %v4325_v24 }
 0xd8a   : > { %v2422_v63 = vpop.xlane.xlu0 %2421 }
 0xd8b   : > { %4222 = vpow2.f32 %v2431_v60  ;;  %v2426_v2 = vsub.f32 %v2410_v37, %v2422_v63 }
 0xd8d   : > { %v2433_v3 = vmul.f32 1.442695, %v2426_v2 }
 0xd8e   : > { %v4219_v5 = vpop.eup %4218 }
 0xd8f   : > { %4224 = vpow2.f32 %v2433_v3  ;;  %v2435_v6 = vsel %vm1176_vm8, %v4219_v5, 0.0 }
 0xd90   : > { %2436 = vadd.xlane.f32.xlu1 %v2435_v6 }
 0xd92   : > { %v4221_v33 = vpop.eup %4220 }
 0xd93   : > { %v2438_v9 = vsel %vm1176_vm8, %v4221_v33, 0.0 }
 0xd94   : > { %2439 = vadd.xlane.f32.xlu0 %v2438_v9 }
 0xd95   : > { %v4223_v11 = vpop.eup %4222 }
 0xd96   : > { %v2441_v13 = vsel %vm1176_vm8, %v4223_v11, 0.0 }
 0xd97   : > { %2442 = vadd.xlane.f32.xlu1 %v2441_v13 }
 0xd99   : > { %v4225_v14 = vpop.eup %4224 }
 0xd9a   : > { %v2444_v18 = vsel %vm1176_vm8, %v4225_v14, 0.0 }
 0xd9b   : > { %2445 = vadd.xlane.f32.xlu0 %v2444_v18 }
 0xda8   : > { %2607 = vrot.lane.b32.xlu1 %v4859_v19, %s4328_s24 }
 0xdac   : > { %2683 = vrot.lane.b32.xlu1 %v4864_v20, %s4328_s24 }
 0xdb1   : > { %2531 = vrot.lane.b32.xlu0 %v4852_v10, %s4328_s24  ;;  %s4260_s24 = scalar_lea.vmem %s5059_s28, 16 }
 0xdb2   : > { %p4261_p11 = scmp.ne.s32.totalorder %s5059_s28, %s4260_s24 }
 0xdb4   : > { %p4262_p12 = pnand %p4261_p11, %p4467_p5 }
 0xdb6   : > { %p4263_p13 = pneg %p4262_p12 }
 0xe1d   : > { %v2437_v22 = vpop.xlane.xlu1 %2436 }
 0xe1e   : > { %4226 = vrcp.f32 %v2437_v22 }
 0xe21   : > { %v2440_v36 = vpop.xlane.xlu0 %2439 }
 0xe22   : > { %4228 = vrcp.f32 %v2440_v36 }
 0xe24   : > { %v2443_v50 = vpop.xlane.xlu1 %2442 }
 0xe25   : > { %4230 = vrcp.f32 %v2443_v50 }
 0xe28   : > { %v4227_v42 = vpop.eup %4226  ;;  %v2446_v23 = vpop.xlane.xlu0 %2445 }
 0xe29   : > { %v2451_v26 = vmul.f32 %v4227_v42, %v4219_v5  ;;  %4232 = vrcp.f32 %v2446_v23  ;;  %v2608_v28 = vpop.permute.xlu1 %2607 }
 0xe2b   : > { %3933 = vmatmul.mubr.msk.f32.vlgmr.msra.gmra.mrb[20].mxu0 %vm1176_vm8, %v2451_v26 }
 0xe2c   : > { %v4229_v19 = vpop.eup %4228  ;;  %3941 = vmatpush3.msra.mxu0 %v2608_v28  ;;  %v2532_v29 = vpop.permute.xlu0 %2531  ;;  %3942 = vmatprep.mubr.msk.f32.mxu0 %vm4326_vm7, %v4325_v24 }
 0xe2d   : > { %v2452_v10 = vmul.f32 %v4229_v19, %v4221_v33  ;;  %3936 = vmatpush3.msra.mxu1 %v2532_v29  ;;  %4088 = vmatprep.subr.bf16.mxu0 %v4643_v58  ;;  %v2684_v30 = vpop.permute.xlu1 %2683 }
 0xe2e   : > { %3945 = vmatprep.subr.mxu1 %v4325_v24 }
 0xe2f   : > { %v4231_v20 = vpop.eup %4230  ;;  %3938 = vmatmul.mubr.msk.f32.vlgmr.msra.gmra.mrb[28].mxu1 %vm1176_vm8, %v2452_v10 }
 0xe30   : > { %v2453_v31 = vmul.f32 %v4231_v20, %v4223_v11  ;;  %3946 = vmatpush3.msra.mxu1 %v2684_v30  ;;  %3947 = vmatprep.mubr.msk.f32.mxu1 %vm4326_vm7, %v4325_v24 }
 0xe31   : > { %4096 = vmatprep.subr.bf16.mxu1 %v4697_v61 }
 0xe32   : > { %3943 = vmatmul.mubr.msk.f32.vlgmr.msra.gmra.mrb[22].mxu0 %vm1176_vm8, %v2453_v31 }
 0xe33   : > { %v4233_v8 = vpop.eup %4232  ;;  %4090 = vmatpush3.bf16.msra.mxu0 %v4643_v58 }
 0xe34   : > { %v2454_v43 = vmul.f32 %v4233_v8, %v4225_v14  ;;  %4092 = vmatprep.subr.bf16.mxu0 %v4662_v4 }
 0xe36   : > { %3948 = vmatmul.mubr.msk.f32.vlgmr.msra.gmra.mrb[30].mxu1 %vm1176_vm8, %v2454_v43 }
 0xe37   : > { %4094 = vmatpush3.bf16.msra.mxu0 %v4662_v4  ;;  %4098 = vmatpush3.bf16.msra.mxu1 %v4697_v61 }
 0xe38   : > { %4100 = vmatprep.subr.bf16.mxu1 %v4706_v0  ;;  %4104 = vmatprep.subr.bf16.mxu0 %v4754_v39 }
 0xe3b   : > { %4102 = vmatpush3.bf16.msra.mxu1 %v4706_v0 }
 0xefe   : > { %v2527_v12 = vpop.f32.mrb[20].mxu0 }
 0xeff   : > { %v3934_v34 = vpop.f32.mrb[21].mxu0  ;;  %3958 = vmatprep.mubr.msk.f32.mxu0 %vm766_vm6, %v2527_v12 }
 0xf02   : > { %v2603_v58 = vpop.f32.mrb[28].mxu1 }
 0xf03   : > { %v3939_v35 = vpop.f32.mrb[29].mxu1  ;;  %3959 = vmatmul.mubr.msk.f32.vlgmr.msra.gmra.mrb[24].mxu0 %vm766_vm6, %v2603_v58 }
 0xf04   : > { %4106 = vmatpush3.bf16.msra.mxu0 %v4754_v39 }
 0xf05   : > { %v2679_v25 = vpop.f32.mrb[22].mxu0  ;;  %4108 = vmatprep.subr.bf16.mxu0 %v4764_v41 }
 0xf06   : > { %v3944_v4 = vpop.f32.mrb[23].mxu0  ;;  %3961 = vmatprep.mubr.msk.f32.mxu0 %vm766_vm6, %v2679_v25 }
 0xf08   : > { %4110 = vmatpush3.bf16.msra.mxu0 %v4764_v41 }
 0xf09   : > { %v2755_v61 = vpop.f32.mrb[30].mxu1  ;;  %4112 = vmatprep.subr.bf16.mxu0 %v4774_v46 }
 0xf0a   : > { %v3949_v0 = vpop.f32.mrb[31].mxu1  ;;  %3962 = vmatmul.mubr.msk.f32.gmra.mrb[26].mxu0 %vm766_vm6, %v2755_v61 }
 0xf0c   : > { %4114 = vmatpush3.bf16.msra.mxu0 %v4774_v46 }
 0xf0d   : > { %4116 = vmatprep.subr.bf16.mxu0 %v4784_v49 }
 0xf10   : > { %4118 = vmatpush3.bf16.msra.mxu0 %v4784_v49 }
 0xfd6   : > { %v3960_v39 = vpop.f32.mrb[24].mxu0 }
 0xfd7   : > { %v2847_v38 = vadd.f32 %v3960_v39, %v4673_v15  ;;  %v2841_v37 = vpop.f32.mrb[25].mxu0 }
 0xfd8   : > { %v2842_v40 = vadd.f32 %v4673_v15, %v2841_v37 }
 0xfd9   : > { %v2861_v41 = vadd.f32 %v2847_v38, %v4831_v1 }
 0xfda   : > { %v2860_v44 = vadd.f32 %v2842_v40, %v4828_v62 }
 0xfdb   : > { %v2867_v45 = vsel %vm766_vm6, %v2861_v41, 0.0 }
 0xfdc   : > { %2868 = vadd.xlane.f32.xlu1 %v2867_v45  ;;  %v2864_v48 = vsel %vm766_vm6, %v2860_v44, 0.0 }
 0xfdd   : > { %2865 = vadd.xlane.f32.xlu0 %v2864_v48  ;;  %v3963_v46 = vpop.f32.mrb[26].mxu0 }
 0xfde   : > { %v2851_v47 = vpop.f32.mrb[27].mxu0  ;;  %v2857_v49 = vadd.f32 %v3963_v46, %v4673_v15 }
 0xfdf   : > { %v2852_v54 = vadd.f32 %v4673_v15, %v2851_v47 }
 0xfe0   : > { %v2863_v1 = vadd.f32 %v2857_v49, %v4843_v7 }
 0xfe1   : > { %v2862_v55 = vadd.f32 %v2852_v54, %v4840_v32 }
 0xfe2   : > { %v2873_v62 = vsel %vm766_vm6, %v2863_v1, 0.0 }
 0xfe3   : > { %v2870_v56 = vsel %vm766_vm6, %v2862_v55, 0.0 }
 0xfe4   : > { %2871 = vadd.xlane.f32.xlu0 %v2870_v56 }
 0xfe8   : > { %2874 = vadd.xlane.f32.xlu0 %v2873_v62 }
0x1069   : > { %v2869_v57 = vpop.xlane.xlu1 %2868 }
0x106a   : > { %v2877_v52 = vmul.f32 0.03125, %v2869_v57  ;;  %v2866_v59 = vpop.xlane.xlu0 %2865 }
0x106b   : > { %v2876_v60 = vmul.f32 0.03125, %v2866_v59 }
0x106c   : > { %v2881_v63 = vsub.f32 %v2861_v41, %v2877_v52 }
0x106d   : > { %v2880_v2 = vsub.f32 %v2860_v44, %v2876_v60 }
0x106e   : > { %v2885_v3 = vmul.f32 %v2881_v63, %v2881_v63 }
0x106f   : > { %v2884_v5 = vmul.f32 %v2880_v2, %v2880_v2 }
0x1070   : > { %v2891_v15 = vsel %vm766_vm6, %v2885_v3, 0.0 }
0x1071   : > { %v2872_v6 = vpop.xlane.xlu0 %2871  ;;  %2892 = vadd.xlane.f32.xlu0 %v2891_v15  ;;  %v2888_v32 = vsel %vm766_vm6, %v2884_v5, 0.0 }
0x1072   : > { %v2878_v33 = vmul.f32 0.03125, %v2872_v6  ;;  %2889 = vadd.xlane.f32.xlu1 %v2888_v32 }
0x1074   : > { %v2882_v7 = vsub.f32 %v2862_v55, %v2878_v33 }
0x1075   : > { %v2875_v9 = vpop.xlane.xlu0 %2874 }
0x1076   : > { %v2879_v11 = vmul.f32 0.03125, %v2875_v9  ;;  %v2886_v13 = vmul.f32 %v2882_v7, %v2882_v7 }
0x1078   : > { %v2883_v14 = vsub.f32 %v2863_v1, %v2879_v11  ;;  %v2894_v18 = vsel %vm766_vm6, %v2886_v13, 0.0 }
0x1079   : > { %2895 = vadd.xlane.f32.xlu1 %v2894_v18 }
0x107a   : > { %v2887_v22 = vmul.f32 %v2883_v14, %v2883_v14 }
0x107c   : > { %v2897_v36 = vsel %vm766_vm6, %v2887_v22, 0.0 }
0x107d   : > { %2898 = vadd.xlane.f32.xlu0 %v2897_v36 }
0x10fe   : > { %v2893_v50 = vpop.xlane.xlu0 %2892 }
0x10ff   : > { %v2901_v42 = vmul.f32 0.03125, %v2893_v50  ;;  %v2890_v23 = vpop.xlane.xlu1 %2889 }
0x1100   : > { %v2900_v26 = vmul.f32 0.03125, %v2890_v23 }
0x1101   : > { %v2905_v28 = vadd.f32 1e-12, %v2901_v42 }
0x1102   : > { %v2904_v19 = vadd.f32 1e-12, %v2900_v26 }
0x1103   : > { %4234 = vrsqrt.f32 %v2905_v28 }
0x1104   : > { %4236 = vrsqrt.f32 %v2904_v19 }
0x1106   : > { %v2896_v29 = vpop.xlane.xlu1 %2895 }
0x1107   : > { %v2902_v10 = vmul.f32 0.03125, %v2896_v29 }
0x1109   : > { %v2906_v20 = vadd.f32 1e-12, %v2902_v10 }
0x110a   : > { %v2899_v30 = vpop.xlane.xlu0 %2898 }
0x110b   : > { %4238 = vrsqrt.f32 %v2906_v20  ;;  %v2903_v31 = vmul.f32 0.03125, %v2899_v30 }
0x110d   : > { %v4235_v8 = vpop.eup %4234  ;;  %v2907_v43 = vadd.f32 1e-12, %v2903_v31 }
0x110e   : > { %v4237_v12 = vpop.eup %4236  ;;  %v2913_v34 = vmul.f32 %v4235_v8, %v2881_v63 }
0x110f   : > { %4240 = vrsqrt.f32 %v2907_v43  ;;  %v2912_v58 = vmul.f32 %v4237_v12, %v2880_v2 }
0x1110   : > { %v2917_v35 = vmul.f32 %v2913_v34, %v4715_v21 }
0x1111   : > { %v2916_v25 = vmul.f32 %v2912_v58, %v4715_v21 }
0x1112   : > { %v4958_v61 = vadd.f32 %v2917_v35, %v4718_v27 }
0x1113   : > { %v4955_v4 = vadd.f32 %v2916_v25, %v4718_v27 }
0x1115   : > { %v4239_v0 = vpop.eup %4238  ;;  %3972 = vmatprep.mubr.msk.f32.mxu1 %vm766_vm6, %v4955_v4 }
0x1116   : > { %3973 = vmatmul.mubr.msk.f32.vlgmr.msra.gmra.mrb[32].mxu1 %vm766_vm6, %v4958_v61  ;;  %v2914_v39 = vmul.f32 %v4239_v0, %v2882_v7 }
0x1118   : > { %v2918_v38 = vmul.f32 %v2914_v39, %v4715_v21 }
0x1119   : > { %v4241_v37 = vpop.eup %4240 }
0x111a   : > { %v4966_v40 = vadd.f32 %v2918_v38, %v4718_v27  ;;  %v2915_v41 = vmul.f32 %v4241_v37, %v2883_v14 }
0x111c   : > { %3975 = vmatprep.mubr.msk.f32.mxu1 %vm766_vm6, %v4966_v40  ;;  %v2919_v44 = vmul.f32 %v2915_v41, %v4715_v21 }
0x111e   : > { %v4972_v45 = vadd.f32 %v2919_v44, %v4718_v27 }
0x1120   : > { %3976 = vmatmul.mubr.msk.f32.gmra.mrb[34].mxu1 %vm766_vm6, %v4972_v45 }
0x1121   : > { %4008 = vmatprep.mubr.msk.f32.mxu1 %vm4326_vm7, %v4325_v24 }
0x11e9   : > { %v3974_v48 = vpop.f32.mrb[32].mxu1 }
0x11ea   : > { %v3012_v46 = vadd.f32 %v3974_v48, %v4792_v51  ;;  %v3006_v47 = vpop.f32.mrb[33].mxu1 }
0x11eb   : > { %v3007_v49 = vadd.f32 %v4792_v51, %v3006_v47 }
0x11ec   : > { %v3026_v54 = vmul.f32 %v3012_v46, %v3012_v46 }
0x11ed   : > { %v3025_v55 = vmul.f32 %v3007_v49, %v3007_v49 }
0x11ee   : > { %v3030_v56 = vmul.f32 %v3026_v54, %v3012_v46 }
0x11ef   : > { %v3029_v1 = vmul.f32 %v3025_v55, %v3007_v49 }
0x11f0   : > { %v3034_v21 = vmul.f32 0.044715, %v3030_v56 }
0x11f1   : > { %v3033_v62 = vmul.f32 0.044715, %v3029_v1 }
0x11f2   : > { %v3038_v27 = vadd.f32 %v3034_v21, %v3012_v46 }
0x11f3   : > { %v3037_v57 = vadd.f32 %v3033_v62, %v3007_v49  ;;  %v3977_v52 = vpop.f32.mrb[34].mxu1 }
0x11f4   : > { %v3042_v59 = vmul.f32 0.7978846, %v3038_v27  ;;  %v3022_v60 = vadd.f32 %v3977_v52, %v4792_v51  ;;  %v3016_v63 = vpop.f32.mrb[35].mxu1 }
0x11f5   : > { %v3041_v2 = vmul.f32 0.7978846, %v3037_v57  ;;  %v3017_v3 = vadd.f32 %v4792_v51, %v3016_v63 }
0x11f6   : > { %4242 = vtanh.f32 %v3042_v59  ;;  %v3028_v5 = vmul.f32 %v3022_v60, %v3022_v60 }
0x11f7   : > { %4244 = vtanh.f32 %v3041_v2  ;;  %v3027_v15 = vmul.f32 %v3017_v3, %v3017_v3 }
0x11f8   : > { %v3032_v6 = vmul.f32 %v3028_v5, %v3022_v60 }
0x11f9   : > { %v3031_v32 = vmul.f32 %v3027_v15, %v3017_v3  ;;  %v3230_v15 = vld [vmem:[%s5111_s12] sm:$0xff] }
0x11fa   : > { %v3036_v33 = vmul.f32 0.044715, %v3032_v6  ;;  %v3231_v6 = vld [vmem:[%s5111_s12 + $0x8] sm:$0xff] }
0x11fb   : > { %v3035_v7 = vmul.f32 0.044715, %v3031_v32  ;;  %v4120_v32 = vpack.c.bf16 %v3231_v6, %v3230_v15 }
0x11fc   : > { %v3040_v9 = vadd.f32 %v3036_v33, %v3022_v60  ;;  %v4329_v33 = vmov 0.0|0.0  }
0x11fd   : > { %v3039_v11 = vadd.f32 %v3035_v7, %v3017_v3  ;;  %4119 = vmatprep.subr.bf16.mxu1 %v4329_v33  ;;  %v3232_v7 = vld [vmem:[%s5111_s12 + $0x10] sm:$0xff] }
0x11fe   : > { %v3044_v13 = vmul.f32 0.7978846, %v3040_v9  ;;  %v3233_v9 = vld [vmem:[%s5111_s12 + $0x18] sm:$0xff]  ;;  %4121 = vmatpush3.bf16.msra.mxu1 %v4120_v32 }
0x11ff   : > { %v3043_v14 = vmul.f32 0.7978846, %v3039_v11  ;;  %v4123_v11 = vpack.c.bf16 %v3233_v9, %v3232_v7  ;;  %4122 = vmatprep.subr.bf16.mxu1 %v4329_v33 }
0x1200   : > { %v4243_v18 = vpop.eup %4242  ;;  %4246 = vtanh.f32 %v3044_v13 }
0x1201   : > { %v4245_v22 = vpop.eup %4244  ;;  %v3050_v36 = vadd.f32 1.0, %v4243_v18  ;;  %4248 = vtanh.f32 %v3043_v14 }
0x1202   : > { %v3049_v50 = vadd.f32 1.0, %v4245_v22  ;;  %4124 = vmatpush3.bf16.msra.mxu1 %v4123_v11 }
0x1203   : > { %v3054_v42 = vmul.f32 0.5, %v3050_v36  ;;  %4125 = vmatprep.subr.bf16.mxu1 %v4329_v33 }
0x1204   : > { %v3053_v51 = vmul.f32 0.5, %v3049_v50 }
0x1205   : > { %v3058_v26 = vmul.f32 %v3054_v42, %v3012_v46 }
0x1206   : > { %v3057_v23 = vmul.f32 %v3053_v51, %v3007_v49 }
0x1208   : > { %3994 = vmatprep.mubr.msk.f32.mxu0 %vm1836_vm9, %v3057_v23 }
0x1209   : > { %3995 = vmatmul.mubr.msk.f32.vlgmr.msra.gmra.mrb[28].mxu0 %vm1836_vm9, %v3058_v26 }
0x120a   : > { %v4247_v28 = vpop.eup %4246 }
0x120b   : > { %v4249_v19 = vpop.eup %4248  ;;  %v3052_v29 = vadd.f32 1.0, %v4247_v28 }
0x120c   : > { %v3051_v10 = vadd.f32 1.0, %v4249_v19 }
0x120d   : > { %v3056_v20 = vmul.f32 0.5, %v3052_v29 }
0x120e   : > { %v3055_v30 = vmul.f32 0.5, %v3051_v10 }
0x120f   : > { %v3060_v8 = vmul.f32 %v3056_v20, %v3022_v60 }
0x1210   : > { %v3059_v31 = vmul.f32 %v3055_v30, %v3017_v3 }
0x1212   : > { %3997 = vmatprep.mubr.msk.f32.mxu0 %vm1836_vm9, %v3059_v31 }
0x1213   : > { %3998 = vmatmul.mubr.msk.f32.gmra.mrb[30].mxu0 %vm1836_vm9, %v3060_v8 }
0x12dc   : > { %v3996_v43 = vpop.f32.mrb[28].mxu0 }
0x12dd   : > { %v3153_v12 = vadd.f32 %v3996_v43, %v4807_v53  ;;  %v3147_v34 = vpop.f32.mrb[29].mxu0 }
0x12de   : > { %v3148_v58 = vadd.f32 %v4807_v53, %v3147_v34 }
0x12df   : > { %v3167_v35 = vadd.f32 %v3153_v12, %v4958_v61 }
0x12e0   : > { %v3166_v0 = vadd.f32 %v3148_v58, %v4955_v4 }
0x12e1   : > { %v3173_v25 = vsel %vm766_vm6, %v3167_v35, 0.0 }
0x12e2   : > { %3174 = vadd.xlane.f32.xlu1 %v3173_v25  ;;  %v3170_v39 = vsel %vm766_vm6, %v3166_v0, 0.0 }
0x12e6   : > { %3171 = vadd.xlane.f32.xlu1 %v3170_v39  ;;  %v3999_v38 = vpop.f32.mrb[30].mxu0 }
0x12e7   : > { %v3157_v37 = vpop.f32.mrb[31].mxu0  ;;  %v3163_v41 = vadd.f32 %v3999_v38, %v4807_v53 }
0x12e8   : > { %v3158_v44 = vadd.f32 %v4807_v53, %v3157_v37 }
0x12e9   : > { %v3169_v61 = vadd.f32 %v3163_v41, %v4972_v45 }
0x12ea   : > { %v3168_v48 = vadd.f32 %v3158_v44, %v4966_v40 }
0x12eb   : > { %v3179_v47 = vsel %vm766_vm6, %v3169_v61, 0.0 }
0x12ec   : > { %v3176_v46 = vsel %vm766_vm6, %v3168_v48, 0.0 }
0x12ed   : > { %3177 = vadd.xlane.f32.xlu0 %v3176_v46 }
0x12f1   : > { %3180 = vadd.xlane.f32.xlu0 %v3179_v47 }
0x136f   : > { %v3175_v4 = vpop.xlane.xlu1 %3174 }
0x1370   : > { %v3183_v49 = vmul.f32 0.03125, %v3175_v4  ;;  %v3328_v4 = vld [vmem:[%s5113_s14 + $0x8] sm:$0xff] }
0x1372   : > { %v3187_v54 = vsub.f32 %v3167_v35, %v3183_v49 }
0x1373   : > { %v3172_v55 = vpop.xlane.xlu1 %3171 }
0x1374   : > { %v3182_v56 = vmul.f32 0.03125, %v3172_v55  ;;  %v3191_v1 = vmul.f32 %v3187_v54, %v3187_v54 }
0x1376   : > { %v3186_v21 = vsub.f32 %v3166_v0, %v3182_v56  ;;  %v3197_v62 = vsel %vm766_vm6, %v3191_v1, 0.0  ;;  %v3635_v56 = vld [vmem:[%s5112_s13] ss:$0 sm:$0xff] }
0x1377   : > { %3198 = vadd.xlane.f32.xlu1 %v3197_v62 }
0x1378   : > { %v3190_v53 = vmul.f32 %v3186_v21, %v3186_v21 }
0x137a   : > { %v3178_v40 = vpop.xlane.xlu0 %3177  ;;  %v3194_v27 = vsel %vm766_vm6, %v3190_v53, 0.0 }
0x137b   : > { %v3184_v57 = vmul.f32 0.03125, %v3178_v40  ;;  %3195 = vadd.xlane.f32.xlu1 %v3194_v27  ;;  %v3637_v40 = vld [vmem:[%s5114_s15] ss:$0 sm:$0xff] }
0x137d   : > { %v3188_v45 = vsub.f32 %v3168_v48, %v3184_v57 }
0x137e   : > { %v3181_v52 = vpop.xlane.xlu0 %3180 }
0x137f   : > { %v3185_v59 = vmul.f32 0.03125, %v3181_v52  ;;  %v3192_v60 = vmul.f32 %v3188_v45, %v3188_v45  ;;  %v3411_v52 = vld [vmem:[%s5115_s16] sm:$0x1] }
0x1381   : > { %v3189_v63 = vsub.f32 %v3169_v61, %v3185_v59  ;;  %v3200_v2 = vsel %vm766_vm6, %v3192_v60, 0.0  ;;  %v3413_v59 = vstv %s3412_s0  ;;  %s4264_s0 = sshll.u32 %s4330_s17, 4  ;;  %s4265_s0 = int_to_ptr.vmem [resolvable:$false] %s4264_s0 }
0x1382   : > { %3201 = vadd.xlane.f32.xlu0 %v3200_v2  ;;  %s4266_s3 = scalar_lea.vmem %s4265_s0, 32  ;;  %p4267_p0 = scmp.lt.s32.totalorder %s5059_s28, %s4265_s0 }
0x1383   : > { %v3193_v3 = vmul.f32 %v3189_v63, %v3189_v63  ;;  %p4268_p1 = scmp.lt.s32.totalorder %s4266_s3, %s4260_s24 }
0x1385   : > { %v3203_v5 = vsel %vm766_vm6, %v3193_v3, 0.0  ;;  %p4269_p2 = por %p4268_p1, %p4267_p0 }
0x1386   : > { %3204 = vadd.xlane.f32.xlu0 %v3203_v5 }
0x1387   : > { %p4270_p3 = pnand %p4269_p2, %p4263_p13 }
0x1404   : > { %v3199_v13 = vpop.xlane.xlu1 %3198 }
0x1405   : > { %v3207_v14 = vmul.f32 0.03125, %v3199_v13 }
0x1407   : > { %v3211_v36 = vadd.f32 1e-12, %v3207_v14 }
0x1408   : > { %v3196_v18 = vpop.xlane.xlu1 %3195 }
0x1409   : > { %v3206_v22 = vmul.f32 0.03125, %v3196_v18  ;;  %4250 = vrsqrt.f32 %v3211_v36 }
0x140b   : > { %v3210_v50 = vadd.f32 1e-12, %v3206_v22 }
0x140d   : > { %4252 = vrsqrt.f32 %v3210_v50 }
0x140f   : > { %v3202_v42 = vpop.xlane.xlu0 %3201 }
0x1410   : > { %v3208_v51 = vmul.f32 0.03125, %v3202_v42 }
0x1412   : > { %v3212_v23 = vadd.f32 1e-12, %v3208_v51 }
0x1413   : > { %v3205_v26 = vpop.xlane.xlu0 %3204  ;;  %v4251_v29 = vpop.eup %4250 }
0x1414   : > { %4254 = vrsqrt.f32 %v3212_v23  ;;  %v3209_v28 = vmul.f32 0.03125, %v3205_v26  ;;  %v3219_v20 = vmul.f32 %v4251_v29, %v3187_v54  ;;  %v3330_v54 = vld [vmem:[%s5113_s14 + $0x18] sm:$0xff] }
0x1416   : > { %v3213_v19 = vadd.f32 1e-12, %v3209_v28  ;;  %v3223_v8 = vmul.f32 %v3219_v20, %v4510_v16 }
0x1417   : > { %v4253_v10 = vpop.eup %4252 }
0x1418   : > { %4256 = vrsqrt.f32 %v3213_v19  ;;  %v3218_v30 = vmul.f32 %v4253_v10, %v3186_v21  ;;  %v3227_v35 = vadd.f32 %v3223_v8, %v4513_v17 }
0x141a   : > { %v3222_v12 = vmul.f32 %v3218_v30, %v4510_v16  ;;  %v3245_v41 = vrot.slane %v3227_v35, 7 }
0x141c   : > { %v3226_v39 = vadd.f32 %v3222_v12, %v4513_v17 }
0x141e   : > { %v4255_v31 = vpop.eup %4254  ;;  %v3247_v48 = vsel %vm3246_vm10, %v3245_v41, %v3226_v39 }
0x141f   : > { %v3220_v43 = vmul.f32 %v4255_v31, %v3188_v45 }
0x1421   : > { %v3224_v34 = vmul.f32 %v3220_v43, %v4510_v16 }
0x1422   : > { %v4257_v58 = vpop.eup %4256 }
0x1423   : > { %v3221_v25 = vmul.f32 %v4257_v58, %v3189_v63  ;;  %v3228_v0 = vadd.f32 %v3224_v34, %v4513_v17 }
0x1425   : > { %v3225_v38 = vmul.f32 %v3221_v25, %v4510_v16  ;;  %v3248_v37 = vrot.slane %v3228_v0, 6  ;;  %v3327_v16 = vld [vmem:[%s5113_s14] sm:$0xff] }
0x1426   : > { %v4126_v49 = vpack.c.bf16 %v3328_v4, %v3327_v16 }
0x1427   : > { %v3229_v44 = vadd.f32 %v3225_v38, %v4513_v17  ;;  %v3250_v61 = vsel %vm3249_vm11, %v3248_v37, %v3247_v48  ;;  %v3329_v17 = vld [vmem:[%s5113_s14 + $0x10] sm:$0xff] }
0x1428   : > { %v4129_v55 = vpack.c.bf16 %v3330_v54, %v3329_v17 }
0x1429   : > { %v3251_v46 = vrot.slane %v3229_v44, 5 }
0x142b   : > { %v3253_v47 = vsel %vm3252_vm12, %v3251_v46, %v3250_v61 }
0x142c   : > { %4009 = vmatmul.mubr.msk.f32.vlgmr.msra.gmra.mrb[36].mxu1 %vm766_vm6, %v3253_v47 }
0x142d   : > { %4019 = vmatprep.mubr.msk.f32.mxu1 %vm4326_vm7, %v4325_v24  ;;  %4127 = vmatpush3.bf16.msra.mxu1 %v4126_v49 }
0x142e   : > { %4128 = vmatprep.subr.bf16.mxu1 %v4329_v33 }
0x1431   : > { %4130 = vmatpush3.bf16.msra.mxu1 %v4129_v55 }
0x1432   : > { %4022 = vmatprep.subr.mxu1 %v4325_v24 }
0x14ff   : > { %v3322_v1 = vpop.f32.mrb[36].mxu1 }
0x1500   : > { %v3323_v21 = vadd.f32 %v3635_v56, %v3322_v1  ;;  %v4010_v62 = vpop.f32.mrb[37].mxu1 }
0x1502   : > { %4258 = vtanh.f32 %v3323_v21 }
0x150c   : > { %v4259_v53 = vpop.eup %4258 }
0x150d   : > { %4020 = vmatmul.mubr.msk.f32.vlgmr.msra.gmra.mrb[38].mxu1 %vm766_vm6, %v4259_v53 }
0x150e   : > { %4024 = vmatprep.mubr.msk.f32.mxu1 %vm4326_vm7, %v4325_v24 }
0x15e0   : > { %v3407_v27 = vpop.f32.mrb[38].mxu1 }
0x15e1   : > { %v3408_v57 = vadd.f32 %v3637_v40, %v3407_v27  ;;  %v4021_v45 = vpop.f32.mrb[39].mxu1 }
0x15e3   : > { %4023 = vmatpush3.xpose.msk.msra.mxu1 %vm766_vm6, %v3408_v57 }
0x15e6   : > { %4025 = vmatmul.mubr.msk.f32.vlgmr.msra.gmra.mrb[40].mxu1 %vm766_vm6, %v3411_v52 }
0x16b9   : > { %v3486_v24 = vpop.f32.mrb[40].mxu1 }
0x16ba   : > { %v3487_v60 = vadd.f32 %v3486_v24, %v3413_v59  ;;  %v4026_v63 = vpop.f32.mrb[41].mxu1 }
0x16bc   : > { %3491 = vst.msk [vmem:[%s568_s26] sm:$0x1] %vm3490_vm13, %v3487_v60 }
0x16bd   : > { %4273 = shalt.err (!%p4270_p3)
}
0x16be   : > { %s4274_s2 = scalar_lea.hbm %s5057_s22, 16  ;;  %s4278_s1 = scalar_lea.hbm %s5117_s18, 32 }
0x16bf   : > { %p4275_p4 = scmp.ne.s32.totalorder %s5057_s22, %s4274_s2  ;;  %p4279_p9 = scmp.lt.u32.totalorder %s5057_s22, %s5117_s18 }
0x16c0   : > { %p4280_p10 = scmp.lt.u32.totalorder %s4278_s1, %s4274_s2  ;;  %p4282_p12 = scmp.lt.u32.totalorder %s4274_s2, %s5057_s22 }
0x16c1   : > { %p4276_p7 = pnand %p4275_p4, %p4467_p5 }
0x16c2   : > { %p4281_p11 = por %p4280_p10, %p4279_p9 }
0x16c3   : > { %p4277_p8 = pneg %p4276_p7 }
0x16c4   : > { %p4283_p13 = por %p4282_p12, %p4281_p11 }
0x16c6   : > { %p4284_p0 = pnand %p4283_p13, %p4277_p8 }
0x16c8   : > { %4287 = shalt.err (!%p4284_p0)
}
0x16c9   : > { %4131 = dma.vmem_to_hbm [thread:$0]  (%p4467_p5), %s5059_s28, 16, %s5057_s22, %s3493_s20  }
0x16ca PF: > { %s5140_s3 = sld [smem:[#allocation6_spill]]  ;;  %p4137_p1 = scmp.ge.s32.totalorder %s4322_s19, 2 }
0x16cc   : > { %p4134_p2 = pnand %p4137_p1, %p4471_p6 }
0x16d0   : > { %s3517_s0 = sand.u32 1, %s5140_s3  }
0x16d1   : > { %s3518_s29 = scalar_lea.sflag [#allocation4], %s3517_s0 }
0x16d2   : > { %4305 = dma.done.wait (!%p4134_p2), %s3518_s29, 16  }
0x16d3   : > { %4307 = vsyncadd (!%p4134_p2), %s3518_s29, 4294967280  ;;  %s5142_s19 = sld [smem:[#allocation8_spill]]  ;;  %s5143_s2 = sld [smem:[#allocation7_spill]] }
0x16d4   : > { %s5144_s0 = sld [smem:[#allocation9_spill]]  ;;  %s5145_s29 = smov %s4314_s30 }
0x16d9   : > { %p29_p3 = scmp.ge.s32.totalorder %s5142_s19, 4   ;;  %s5146_s30 = smov %s5143_s2 }
0x16db   :  { %31 = sbr.rel (!%p29_p3) target bundleno = 9 (0x9), region = 127 }
0x16e2   :  { %3522 = vsyncpa [#allocation4], 1 }
0x16e3   :  { %3524 = vsyncpa [#allocation4 + $0x1], 1 }

</bundles_post_ra>
